<compile_context>
chip_gen: v7x
topology: tpu7x:2x2x1
jax: 0.10.0
libtpu: 0.0.40
codegen_flags: <defaults>
</compile_context>

<pallas_src>
import math
import jax
import jax.numpy as jnp
from jax import lax
from jax.experimental import pallas as pl
from jax.experimental.pallas import tpu as pltpu


def _make_lstm_kernel(n_steps, hidden_dim, matmul_dtype):
    H = hidden_dim

    def kernel(xp_ref, wh_ref, wph_ref, bp_ref, out_ref):
        # xp_ref : (max(n_steps,1), batch, 4H)  precomputed x@Wx + b   (f32)
        # wh_ref : (H, 4H)   fused recurrent weights [g|i|f|o]          (f32)
        # wph_ref: (H, C_pad) output projection (zero-padded lanes)     (f32)
        # bp_ref : (1, C_pad) output bias (-1e30 in padded lanes)       (f32)
        # out_ref: (batch, C_pad) log-softmax (valid in first num_classes lanes)
        batch = xp_ref.shape[1]

        # Loaded once, reused every step; cast to the MXU dtype (bf16 on the
        # fast path -> one MXU pass per step instead of a multi-pass f32 dot).
        wh = wh_ref[...].astype(matmul_dtype)

        # Lane constants for the single-EUP-push gate activation (hoisted out
        # of the loop; broadcast_in_dim is not CSE'd by JAX):
        #   g lanes   [0,H)   : tanh(pre)                    scale=1.0 offset=0.0
        #   i/f/o     [H,4H)  : sigmoid(pre)=0.5*tanh(0.5*pre)+0.5
        #                                                    scale=0.5 offset=0.5
        lane = lax.broadcasted_iota(jnp.int32, (1, 4 * H), 1)
        scale = jnp.where(lane < H, 1.0, 0.5).astype(jnp.float32)
        offset = jnp.where(lane < H, 0.0, 0.5).astype(jnp.float32)

        def step(t, carry):
            h, c = carry
            # Single fused (batch, H) @ (H, 4H) matmul -> lane-dense (batch, 4H).
            pre = xp_ref[t] + jnp.dot(h.astype(matmul_dtype), wh,
                                      preferred_element_type=jnp.float32)
            # ONE full-vreg tanh covers all four gates; the affine fixup for the
            # sigmoid lanes is plain VPU work (plenty of VALU slack per step).
            act = jnp.tanh(pre * scale) * scale + offset
            g = act[:, 0 * H:1 * H]
            i = act[:, 1 * H:2 * H]
            f = act[:, 2 * H:3 * H]
            o = act[:, 3 * H:4 * H]
            c_new = g * i + c * f
            h_new = jnp.tanh(c_new) * o
            return h_new, c_new

        h0 = jnp.zeros((batch, H), jnp.float32)
        c0 = jnp.zeros((batch, H), jnp.float32)
        if n_steps > 0:
            # Bounded unroll: full unroll for short sequences, capped at 8 for
            # long ones (keeps code size / vreg live ranges bounded).
            h_final, _ = lax.fori_loop(0, n_steps, step, (h0, c0),
                                       unroll=min(8, n_steps))
        else:
            h_final = h0

        # Lane-dense final projection + log-softmax (padded lanes hold -1e30,
        # so they contribute ~0 to the sum and never win the max).
        logits = (jnp.dot(h_final, wph_ref[...],
                          preferred_element_type=jnp.float32) + bp_ref[...])
        m = jnp.max(logits, axis=1, keepdims=True)
        s = logits - m
        lse = jnp.log(jnp.sum(jnp.exp(s), axis=1, keepdims=True))
        out_ref[...] = s - lse

    return kernel


def lstm_forward(x_idx, params, *, seq_length, hidden_dim, num_classes,
                 matmul_dtype=jnp.bfloat16):
    batch = x_idx.shape[0]
    H = hidden_dim
    input_dim = params["emb"].shape[1]
    n_steps = seq_length - 1

    # Pad batch to a sublane multiple so all stores are unmasked; the recurrence
    # is row-independent, padded rows are zeros and get sliced off.
    bpad = ((batch + 7) // 8) * 8

    # ---- layout glue (XLA): fuse gate weights along the lane axis [g|i|f|o] ----
    wx = jnp.transpose(params["Wx"], (1, 0, 2)).reshape(input_dim, 4 * H)
    wh = jnp.transpose(params["Wh"], (1, 0, 2)).reshape(H, 4 * H)
    b = params["b"].reshape(1, 4 * H)

    # ---- hoisted input projection (no recurrence dependence), forced f32 ----
    emb = params["emb"][x_idx.astype(jnp.int32)]                  # (batch, seq, in)
    if n_steps > 0:
        x_tm = jnp.transpose(emb[:, :n_steps, :], (1, 0, 2))      # (T, batch, in)
        xp = jnp.einsum("tbi,ih->tbh", x_tm, wx,
                        preferred_element_type=jnp.float32,
                        precision=lax.Precision.HIGHEST) + b
        xp = jnp.pad(xp, ((0, 0), (0, bpad - batch), (0, 0)))
    else:
        xp = jnp.zeros((1, bpad, 4 * H), jnp.float32)             # loop runs 0 steps

    # ---- lane-dense output projection: pad classes up to a multiple of 128 ----
    c_pad = ((num_classes + 127) // 128) * 128
    wph_p = jnp.zeros((H, c_pad), jnp.float32).at[:, :num_classes].set(params["Wph"])
    bp_p = jnp.full((1, c_pad), -1e30, jnp.float32).at[:, :num_classes].set(
        params["bp"].reshape(1, num_classes))

    # TODO(synk): for long sequences / large H on v7x (64 MiB VMEM), do not keep
    # xp as one ungridded VMEM slab: add a grid over T-chunks with
    # BlockSpec((T_chunk, bpad, 4H), lambda t: (t, 0, 0)), carry h/c in VMEM
    # scratch across an "arbitrary" axis, keep Wh resident (bf16), and set
    # vmem_limit_bytes via pltpu.CompilerParams.
    # TODO(synk): for batch >= 16 on v7x, add a leading size-2 "parallel" batch
    # grid axis (or core_map) so both TensorCores run half the batch; at batch=8
    # a gridless single-TC kernel is the right call.
    vmem = pl.BlockSpec(memory_space=pltpu.MemorySpace.VMEM)
    out_pad = pl.pallas_call(
        _make_lstm_kernel(n_steps, H, matmul_dtype),
        out_shape=jax.ShapeDtypeStruct((bpad, c_pad), jnp.float32),
        in_specs=[vmem, vmem, vmem, vmem],
        out_specs=vmem,
    )(xp.astype(jnp.float32), wh.astype(jnp.float32), wph_p, bp_p)

    return out_pad[:batch, :num_classes]


def init_params(key, seq_length, hidden_dim, num_classes):
    # Matches kaiming_init(): 2-D params ~ N(0, 1/sqrt(hidden_dim)), 1-D params = 0.
    input_dim = int(0.25 * hidden_dim)
    std = 1.0 / math.sqrt(hidden_dim)
    keys = jax.random.split(key, 10)
    nrm = lambda k, shp: std * jax.random.normal(k, shp, dtype=jnp.float32)
    params = {
        "emb": nrm(keys[0], (seq_length, input_dim)),
        "Wx": jnp.stack([nrm(keys[1], (input_dim, hidden_dim)),     # [g, i, f, o]
                         nrm(keys[2], (input_dim, hidden_dim)),
                         nrm(keys[3], (input_dim, hidden_dim)),
                         nrm(keys[4], (input_dim, hidden_dim))]),
        "Wh": jnp.stack([nrm(keys[5], (hidden_dim, hidden_dim)),
                         nrm(keys[6], (hidden_dim, hidden_dim)),
                         nrm(keys[7], (hidden_dim, hidden_dim)),
                         nrm(keys[8], (hidden_dim, hidden_dim))]),
        "b": jnp.zeros((4, hidden_dim), jnp.float32),
        "Wph": nrm(keys[9], (hidden_dim, num_classes)),
        "bp": jnp.zeros((num_classes,), jnp.float32),
    }
    return params


def lstm_reference(x_idx, params, *, seq_length, hidden_dim):
    # Pure-JAX reference mirroring the PyTorch forward (per-gate weights, f32).
    emb = params["emb"][x_idx.astype(jnp.int32)]
    batch = x_idx.shape[0]
    h = jnp.zeros((batch, hidden_dim), jnp.float32)
    c = jnp.zeros((batch, hidden_dim), jnp.float32)
    for t in range(seq_length - 1):
        x_t = emb[:, t, :]
        g = jnp.tanh(x_t @ params["Wx"][0] + h @ params["Wh"][0] + params["b"][0])
        i = jax.nn.sigmoid(x_t @ params["Wx"][1] + h @ params["Wh"][1] + params["b"][1])
        f = jax.nn.sigmoid(x_t @ params["Wx"][2] + h @ params["Wh"][2] + params["b"][2])
        o = jax.nn.sigmoid(x_t @ params["Wx"][3] + h @ params["Wh"][3] + params["b"][3])
        c = g * i + c * f
        h = jnp.tanh(c) * o
    logits = h @ params["Wph"] + params["bp"]
    return jax.nn.log_softmax(logits, axis=1)


if __name__ == "__main__":
    # Keep XLA matmuls (reference + hoisted input projection) at full f32 so the
    # only reduced-precision op is the in-kernel bf16 recurrent matmul.
    jax.config.update("jax_default_matmul_precision", "highest")

    seq_length = 8
    hidden_dim = 32      # -> 4*hidden = 128 (lane-dense fused gates)
    num_classes = 10
    batch = 8

    key = jax.random.PRNGKey(0)
    k_param, k_x = jax.random.split(key)
    params = init_params(k_param, seq_length, hidden_dim, num_classes)

    # Input: integer token indices in [0, seq_length), shape (batch, seq_length).
    x_idx = jax.random.randint(k_x, (batch, seq_length), 0, seq_length, dtype=jnp.int32)

    ref = lstm_reference(x_idx, params, seq_length=seq_length, hidden_dim=hidden_dim)

    # Exact-semantics path: f32 recurrent matmul.
    out_f32 = jax.block_until_ready(lstm_forward(
        x_idx, params, seq_length=seq_length, hidden_dim=hidden_dim,
        num_classes=num_classes, matmul_dtype=jnp.float32))
    assert out_f32.shape == (batch, num_classes)
    assert jnp.allclose(out_f32, ref, atol=1e-4, rtol=1e-4), "f32 path mismatch"

    # Fast path: bf16 recurrent matmul with f32 accumulation (single MXU pass
    # per step); everything else stays f32.
    out_bf16 = jax.block_until_ready(lstm_forward(
        x_idx, params, seq_length=seq_length, hidden_dim=hidden_dim,
        num_classes=num_classes, matmul_dtype=jnp.bfloat16))
    assert out_bf16.shape == (batch, num_classes)
    assert float(jnp.max(jnp.abs(out_bf16 - ref))) < 1e-2, "bf16 path drifted"

    print("KERNEL_OK")
</pallas_src>

<mosaic_0001>
module attributes {stable_mosaic.version = 11 : i64} {
  func.func @kernel(%arg0: memref<7x8x128xf32, #tpu.memory_space<vmem>>, %arg1: memref<32x128xf32, #tpu.memory_space<vmem>>, %arg2: memref<32x128xf32, #tpu.memory_space<vmem>>, %arg3: memref<1x128xf32, #tpu.memory_space<vmem>>, %arg4: memref<8x128xf32, #tpu.memory_space<vmem>>) attributes {dimension_semantics = [], scalar_prefetch = 0 : i64, scratch_operands = 0 : i64, tpu.core_type = #tpu.core_type<tc>} {
    %c0 = arith.constant 0 : index
    %c0_0 = arith.constant 0 : index
    %0 = vector.load %arg1[%c0, %c0_0] : memref<32x128xf32, #tpu.memory_space<vmem>>, vector<32x128xf32>
    %1 = tpu.iota {dimensions = array<i32: 1>} : vector<1x128xi32>
    %c32_i32 = arith.constant 32 : i32
    %2 = vector.broadcast %c32_i32 : i32 to vector<1x128xi32>
    %3 = arith.cmpi slt, %1, %2 : vector<1x128xi32>
    %cst = arith.constant 1.000000e+00 : f32
    %cst_1 = arith.constant 5.000000e-01 : f32
    %4 = vector.broadcast %cst : f32 to vector<1x128xf32>
    %5 = vector.broadcast %cst_1 : f32 to vector<1x128xf32>
    %6 = arith.select %3, %4, %5 : vector<1x128xi1>, vector<1x128xf32>
    %c32_i32_2 = arith.constant 32 : i32
    %7 = vector.broadcast %c32_i32_2 : i32 to vector<1x128xi32>
    %8 = arith.cmpi slt, %1, %7 : vector<1x128xi32>
    %cst_3 = arith.constant 0.000000e+00 : f32
    %cst_4 = arith.constant 5.000000e-01 : f32
    %9 = vector.broadcast %cst_3 : f32 to vector<1x128xf32>
    %10 = vector.broadcast %cst_4 : f32 to vector<1x128xf32>
    %11 = arith.select %8, %9, %10 : vector<1x128xi1>, vector<1x128xf32>
    %cst_5 = arith.constant 0.000000e+00 : f32
    %12 = vector.broadcast %cst_5 : f32 to vector<8x32xf32>
    %cst_6 = arith.constant 0.000000e+00 : f32
    %13 = vector.broadcast %cst_6 : f32 to vector<8x32xf32>
    %c0_i32 = arith.constant 0 : i32
    %14 = arith.index_cast %c0_i32 : i32 to index
    %c0_7 = arith.constant 0 : index
    %c0_8 = arith.constant 0 : index
    %15 = vector.load %arg0[%14, %c0_7, %c0_8] : memref<7x8x128xf32, #tpu.memory_space<vmem>>, vector<1x8x128xf32>
    %16 = vector.shape_cast %15 : vector<1x8x128xf32> to vector<8x128xf32>
    %cst_9 = arith.constant dense<0.000000e+00> : vector<8x128xf32>
    %17 = tpu.matmul %12, %0, %cst_9 {dimension_numbers = #tpu.dot_dimension_numbers<[1], [0], [0], [1], [0, 0, 1, 1], [], []>, precision = #tpu.contract_precision<fp32>} : vector<8x32xf32>, vector<32x128xf32>, vector<8x128xf32> -> vector<8x128xf32>
    %18 = arith.addf %16, %17 : vector<8x128xf32>
    %19 = vector.broadcast %6 : vector<1x128xf32> to vector<8x128xf32>
    %20 = arith.mulf %18, %19 : vector<8x128xf32>
    %21 = math.tanh %20 : vector<8x128xf32>
    %22 = vector.broadcast %6 : vector<1x128xf32> to vector<8x128xf32>
    %23 = arith.mulf %21, %22 : vector<8x128xf32>
    %24 = vector.broadcast %11 : vector<1x128xf32> to vector<8x128xf32>
    %25 = arith.addf %23, %24 : vector<8x128xf32>
    %26 = vector.extract_strided_slice %25 {offsets = [0, 0], sizes = [8, 32], strides = [1, 1]} : vector<8x128xf32> to vector<8x32xf32>
    %27 = vector.extract_strided_slice %25 {offsets = [0, 32], sizes = [8, 32], strides = [1, 1]} : vector<8x128xf32> to vector<8x32xf32>
    %28 = vector.extract_strided_slice %25 {offsets = [0, 64], sizes = [8, 32], strides = [1, 1]} : vector<8x128xf32> to vector<8x32xf32>
    %29 = vector.extract_strided_slice %25 {offsets = [0, 96], sizes = [8, 32], strides = [1, 1]} : vector<8x128xf32> to vector<8x32xf32>
    %30 = arith.mulf %26, %27 : vector<8x32xf32>
    %31 = arith.mulf %13, %28 : vector<8x32xf32>
    %32 = arith.addf %30, %31 : vector<8x32xf32>
    %33 = math.tanh %32 : vector<8x32xf32>
    %34 = arith.mulf %33, %29 : vector<8x32xf32>
    %c1_i32 = arith.constant 1 : i32
    %35 = arith.index_cast %c1_i32 : i32 to index
    %c0_10 = arith.constant 0 : index
    %c0_11 = arith.constant 0 : index
    %36 = vector.load %arg0[%35, %c0_10, %c0_11] : memref<7x8x128xf32, #tpu.memory_space<vmem>>, vector<1x8x128xf32>
    %37 = vector.shape_cast %36 : vector<1x8x128xf32> to vector<8x128xf32>
    %cst_12 = arith.constant dense<0.000000e+00> : vector<8x128xf32>
    %38 = tpu.matmul %34, %0, %cst_12 {dimension_numbers = #tpu.dot_dimension_numbers<[1], [0], [0], [1], [0, 0, 1, 1], [], []>, precision = #tpu.contract_precision<fp32>} : vector<8x32xf32>, vector<32x128xf32>, vector<8x128xf32> -> vector<8x128xf32>
    %39 = arith.addf %37, %38 : vector<8x128xf32>
    %40 = vector.broadcast %6 : vector<1x128xf32> to vector<8x128xf32>
    %41 = arith.mulf %39, %40 : vector<8x128xf32>
    %42 = math.tanh %41 : vector<8x128xf32>
    %43 = vector.broadcast %6 : vector<1x128xf32> to vector<8x128xf32>
    %44 = arith.mulf %42, %43 : vector<8x128xf32>
    %45 = vector.broadcast %11 : vector<1x128xf32> to vector<8x128xf32>
    %46 = arith.addf %44, %45 : vector<8x128xf32>
    %47 = vector.extract_strided_slice %46 {offsets = [0, 0], sizes = [8, 32], strides = [1, 1]} : vector<8x128xf32> to vector<8x32xf32>
    %48 = vector.extract_strided_slice %46 {offsets = [0, 32], sizes = [8, 32], strides = [1, 1]} : vector<8x128xf32> to vector<8x32xf32>
    %49 = vector.extract_strided_slice %46 {offsets = [0, 64], sizes = [8, 32], strides = [1, 1]} : vector<8x128xf32> to vector<8x32xf32>
    %50 = vector.extract_strided_slice %46 {offsets = [0, 96], sizes = [8, 32], strides = [1, 1]} : vector<8x128xf32> to vector<8x32xf32>
    %51 = arith.mulf %47, %48 : vector<8x32xf32>
    %52 = arith.mulf %32, %49 : vector<8x32xf32>
    %53 = arith.addf %51, %52 : vector<8x32xf32>
    %54 = math.tanh %53 : vector<8x32xf32>
    %55 = arith.mulf %54, %50 : vector<8x32xf32>
    %c2_i32 = arith.constant 2 : i32
    %56 = arith.index_cast %c2_i32 : i32 to index
    %c0_13 = arith.constant 0 : index
    %c0_14 = arith.constant 0 : index
    %57 = vector.load %arg0[%56, %c0_13, %c0_14] : memref<7x8x128xf32, #tpu.memory_space<vmem>>, vector<1x8x128xf32>
    %58 = vector.shape_cast %57 : vector<1x8x128xf32> to vector<8x128xf32>
    %cst_15 = arith.constant dense<0.000000e+00> : vector<8x128xf32>
    %59 = tpu.matmul %55, %0, %cst_15 {dimension_numbers = #tpu.dot_dimension_numbers<[1], [0], [0], [1], [0, 0, 1, 1], [], []>, precision = #tpu.contract_precision<fp32>} : vector<8x32xf32>, vector<32x128xf32>, vector<8x128xf32> -> vector<8x128xf32>
    %60 = arith.addf %58, %59 : vector<8x128xf32>
    %61 = vector.broadcast %6 : vector<1x128xf32> to vector<8x128xf32>
    %62 = arith.mulf %60, %61 : vector<8x128xf32>
    %63 = math.tanh %62 : vector<8x128xf32>
    %64 = vector.broadcast %6 : vector<1x128xf32> to vector<8x128xf32>
    %65 = arith.mulf %63, %64 : vector<8x128xf32>
    %66 = vector.broadcast %11 : vector<1x128xf32> to vector<8x128xf32>
    %67 = arith.addf %65, %66 : vector<8x128xf32>
    %68 = vector.extract_strided_slice %67 {offsets = [0, 0], sizes = [8, 32], strides = [1, 1]} : vector<8x128xf32> to vector<8x32xf32>
    %69 = vector.extract_strided_slice %67 {offsets = [0, 32], sizes = [8, 32], strides = [1, 1]} : vector<8x128xf32> to vector<8x32xf32>
    %70 = vector.extract_strided_slice %67 {offsets = [0, 64], sizes = [8, 32], strides = [1, 1]} : vector<8x128xf32> to vector<8x32xf32>
    %71 = vector.extract_strided_slice %67 {offsets = [0, 96], sizes = [8, 32], strides = [1, 1]} : vector<8x128xf32> to vector<8x32xf32>
    %72 = arith.mulf %68, %69 : vector<8x32xf32>
    %73 = arith.mulf %53, %70 : vector<8x32xf32>
    %74 = arith.addf %72, %73 : vector<8x32xf32>
    %75 = math.tanh %74 : vector<8x32xf32>
    %76 = arith.mulf %75, %71 : vector<8x32xf32>
    %c3_i32 = arith.constant 3 : i32
    %77 = arith.index_cast %c3_i32 : i32 to index
    %c0_16 = arith.constant 0 : index
    %c0_17 = arith.constant 0 : index
    %78 = vector.load %arg0[%77, %c0_16, %c0_17] : memref<7x8x128xf32, #tpu.memory_space<vmem>>, vector<1x8x128xf32>
    %79 = vector.shape_cast %78 : vector<1x8x128xf32> to vector<8x128xf32>
    %cst_18 = arith.constant dense<0.000000e+00> : vector<8x128xf32>
    %80 = tpu.matmul %76, %0, %cst_18 {dimension_numbers = #tpu.dot_dimension_numbers<[1], [0], [0], [1], [0, 0, 1, 1], [], []>, precision = #tpu.contract_precision<fp32>} : vector<8x32xf32>, vector<32x128xf32>, vector<8x128xf32> -> vector<8x128xf32>
    %81 = arith.addf %79, %80 : vector<8x128xf32>
    %82 = vector.broadcast %6 : vector<1x128xf32> to vector<8x128xf32>
    %83 = arith.mulf %81, %82 : vector<8x128xf32>
    %84 = math.tanh %83 : vector<8x128xf32>
    %85 = vector.broadcast %6 : vector<1x128xf32> to vector<8x128xf32>
    %86 = arith.mulf %84, %85 : vector<8x128xf32>
    %87 = vector.broadcast %11 : vector<1x128xf32> to vector<8x128xf32>
    %88 = arith.addf %86, %87 : vector<8x128xf32>
    %89 = vector.extract_strided_slice %88 {offsets = [0, 0], sizes = [8, 32], strides = [1, 1]} : vector<8x128xf32> to vector<8x32xf32>
    %90 = vector.extract_strided_slice %88 {offsets = [0, 32], sizes = [8, 32], strides = [1, 1]} : vector<8x128xf32> to vector<8x32xf32>
    %91 = vector.extract_strided_slice %88 {offsets = [0, 64], sizes = [8, 32], strides = [1, 1]} : vector<8x128xf32> to vector<8x32xf32>
    %92 = vector.extract_strided_slice %88 {offsets = [0, 96], sizes = [8, 32], strides = [1, 1]} : vector<8x128xf32> to vector<8x32xf32>
    %93 = arith.mulf %89, %90 : vector<8x32xf32>
    %94 = arith.mulf %74, %91 : vector<8x32xf32>
    %95 = arith.addf %93, %94 : vector<8x32xf32>
    %96 = math.tanh %95 : vector<8x32xf32>
    %97 = arith.mulf %96, %92 : vector<8x32xf32>
    %c4_i32 = arith.constant 4 : i32
    %98 = arith.index_cast %c4_i32 : i32 to index
    %c0_19 = arith.constant 0 : index
    %c0_20 = arith.constant 0 : index
    %99 = vector.load %arg0[%98, %c0_19, %c0_20] : memref<7x8x128xf32, #tpu.memory_space<vmem>>, vector<1x8x128xf32>
    %100 = vector.shape_cast %99 : vector<1x8x128xf32> to vector<8x128xf32>
    %cst_21 = arith.constant dense<0.000000e+00> : vector<8x128xf32>
    %101 = tpu.matmul %97, %0, %cst_21 {dimension_numbers = #tpu.dot_dimension_numbers<[1], [0], [0], [1], [0, 0, 1, 1], [], []>, precision = #tpu.contract_precision<fp32>} : vector<8x32xf32>, vector<32x128xf32>, vector<8x128xf32> -> vector<8x128xf32>
    %102 = arith.addf %100, %101 : vector<8x128xf32>
    %103 = vector.broadcast %6 : vector<1x128xf32> to vector<8x128xf32>
    %104 = arith.mulf %102, %103 : vector<8x128xf32>
    %105 = math.tanh %104 : vector<8x128xf32>
    %106 = vector.broadcast %6 : vector<1x128xf32> to vector<8x128xf32>
    %107 = arith.mulf %105, %106 : vector<8x128xf32>
    %108 = vector.broadcast %11 : vector<1x128xf32> to vector<8x128xf32>
    %109 = arith.addf %107, %108 : vector<8x128xf32>
    %110 = vector.extract_strided_slice %109 {offsets = [0, 0], sizes = [8, 32], strides = [1, 1]} : vector<8x128xf32> to vector<8x32xf32>
    %111 = vector.extract_strided_slice %109 {offsets = [0, 32], sizes = [8, 32], strides = [1, 1]} : vector<8x128xf32> to vector<8x32xf32>
    %112 = vector.extract_strided_slice %109 {offsets = [0, 64], sizes = [8, 32], strides = [1, 1]} : vector<8x128xf32> to vector<8x32xf32>
    %113 = vector.extract_strided_slice %109 {offsets = [0, 96], sizes = [8, 32], strides = [1, 1]} : vector<8x128xf32> to vector<8x32xf32>
    %114 = arith.mulf %110, %111 : vector<8x32xf32>
    %115 = arith.mulf %95, %112 : vector<8x32xf32>
    %116 = arith.addf %114, %115 : vector<8x32xf32>
    %117 = math.tanh %116 : vector<8x32xf32>
    %118 = arith.mulf %117, %113 : vector<8x32xf32>
    %c5_i32 = arith.constant 5 : i32
    %119 = arith.index_cast %c5_i32 : i32 to index
    %c0_22 = arith.constant 0 : index
    %c0_23 = arith.constant 0 : index
    %120 = vector.load %arg0[%119, %c0_22, %c0_23] : memref<7x8x128xf32, #tpu.memory_space<vmem>>, vector<1x8x128xf32>
    %121 = vector.shape_cast %120 : vector<1x8x128xf32> to vector<8x128xf32>
    %cst_24 = arith.constant dense<0.000000e+00> : vector<8x128xf32>
    %122 = tpu.matmul %118, %0, %cst_24 {dimension_numbers = #tpu.dot_dimension_numbers<[1], [0], [0], [1], [0, 0, 1, 1], [], []>, precision = #tpu.contract_precision<fp32>} : vector<8x32xf32>, vector<32x128xf32>, vector<8x128xf32> -> vector<8x128xf32>
    %123 = arith.addf %121, %122 : vector<8x128xf32>
    %124 = vector.broadcast %6 : vector<1x128xf32> to vector<8x128xf32>
    %125 = arith.mulf %123, %124 : vector<8x128xf32>
    %126 = math.tanh %125 : vector<8x128xf32>
    %127 = vector.broadcast %6 : vector<1x128xf32> to vector<8x128xf32>
    %128 = arith.mulf %126, %127 : vector<8x128xf32>
    %129 = vector.broadcast %11 : vector<1x128xf32> to vector<8x128xf32>
    %130 = arith.addf %128, %129 : vector<8x128xf32>
    %131 = vector.extract_strided_slice %130 {offsets = [0, 0], sizes = [8, 32], strides = [1, 1]} : vector<8x128xf32> to vector<8x32xf32>
    %132 = vector.extract_strided_slice %130 {offsets = [0, 32], sizes = [8, 32], strides = [1, 1]} : vector<8x128xf32> to vector<8x32xf32>
    %133 = vector.extract_strided_slice %130 {offsets = [0, 64], sizes = [8, 32], strides = [1, 1]} : vector<8x128xf32> to vector<8x32xf32>
    %134 = vector.extract_strided_slice %130 {offsets = [0, 96], sizes = [8, 32], strides = [1, 1]} : vector<8x128xf32> to vector<8x32xf32>
    %135 = arith.mulf %131, %132 : vector<8x32xf32>
    %136 = arith.mulf %116, %133 : vector<8x32xf32>
    %137 = arith.addf %135, %136 : vector<8x32xf32>
    %138 = math.tanh %137 : vector<8x32xf32>
    %139 = arith.mulf %138, %134 : vector<8x32xf32>
    %c6_i32 = arith.constant 6 : i32
    %140 = arith.index_cast %c6_i32 : i32 to index
    %c0_25 = arith.constant 0 : index
    %c0_26 = arith.constant 0 : index
    %141 = vector.load %arg0[%140, %c0_25, %c0_26] : memref<7x8x128xf32, #tpu.memory_space<vmem>>, vector<1x8x128xf32>
    %142 = vector.shape_cast %141 : vector<1x8x128xf32> to vector<8x128xf32>
    %cst_27 = arith.constant dense<0.000000e+00> : vector<8x128xf32>
    %143 = tpu.matmul %139, %0, %cst_27 {dimension_numbers = #tpu.dot_dimension_numbers<[1], [0], [0], [1], [0, 0, 1, 1], [], []>, precision = #tpu.contract_precision<fp32>} : vector<8x32xf32>, vector<32x128xf32>, vector<8x128xf32> -> vector<8x128xf32>
    %144 = arith.addf %142, %143 : vector<8x128xf32>
    %145 = vector.broadcast %6 : vector<1x128xf32> to vector<8x128xf32>
    %146 = arith.mulf %144, %145 : vector<8x128xf32>
    %147 = math.tanh %146 : vector<8x128xf32>
    %148 = vector.broadcast %6 : vector<1x128xf32> to vector<8x128xf32>
    %149 = arith.mulf %147, %148 : vector<8x128xf32>
    %150 = vector.broadcast %11 : vector<1x128xf32> to vector<8x128xf32>
    %151 = arith.addf %149, %150 : vector<8x128xf32>
    %152 = vector.extract_strided_slice %151 {offsets = [0, 0], sizes = [8, 32], strides = [1, 1]} : vector<8x128xf32> to vector<8x32xf32>
    %153 = vector.extract_strided_slice %151 {offsets = [0, 32], sizes = [8, 32], strides = [1, 1]} : vector<8x128xf32> to vector<8x32xf32>
    %154 = vector.extract_strided_slice %151 {offsets = [0, 64], sizes = [8, 32], strides = [1, 1]} : vector<8x128xf32> to vector<8x32xf32>
    %155 = vector.extract_strided_slice %151 {offsets = [0, 96], sizes = [8, 32], strides = [1, 1]} : vector<8x128xf32> to vector<8x32xf32>
    %156 = arith.mulf %152, %153 : vector<8x32xf32>
    %157 = arith.mulf %137, %154 : vector<8x32xf32>
    %158 = arith.addf %156, %157 : vector<8x32xf32>
    %159 = math.tanh %158 : vector<8x32xf32>
    %160 = arith.mulf %159, %155 : vector<8x32xf32>
    %c7_i32 = arith.constant 7 : i32
    %c0_28 = arith.constant 0 : index
    %c0_29 = arith.constant 0 : index
    %161 = vector.load %arg2[%c0_28, %c0_29] : memref<32x128xf32, #tpu.memory_space<vmem>>, vector<32x128xf32>
    %cst_30 = arith.constant dense<0.000000e+00> : vector<8x128xf32>
    %162 = tpu.matmul %160, %161, %cst_30 {dimension_numbers = #tpu.dot_dimension_numbers<[1], [0], [0], [1], [0, 0, 1, 1], [], []>, precision = #tpu.contract_precision<fp32>} : vector<8x32xf32>, vector<32x128xf32>, vector<8x128xf32> -> vector<8x128xf32>
    %c0_31 = arith.constant 0 : index
    %c0_32 = arith.constant 0 : index
    %163 = vector.load %arg3[%c0_31, %c0_32] : memref<1x128xf32, #tpu.memory_space<vmem>>, vector<1x128xf32>
    %164 = vector.broadcast %163 : vector<1x128xf32> to vector<8x128xf32>
    %165 = arith.addf %162, %164 : vector<8x128xf32>
    %cst_33 = arith.constant dense<0xFF800000> : vector<8xf32>
    %166 = vector.multi_reduction <maximumf>, %165, %cst_33 [1] : vector<8x128xf32> to vector<8xf32>
    %167 = vector.shape_cast %166 : vector<8xf32> to vector<8x1xf32>
    %168 = vector.broadcast %167 : vector<8x1xf32> to vector<8x128xf32>
    %169 = arith.subf %165, %168 : vector<8x128xf32>
    %170 = math.exp %169 : vector<8x128xf32>
    %cst_34 = arith.constant dense<0.000000e+00> : vector<8xf32>
    %171 = vector.multi_reduction <add>, %170, %cst_34 [1] : vector<8x128xf32> to vector<8xf32>
    %172 = vector.shape_cast %171 : vector<8xf32> to vector<8x1xf32>
    %173 = math.log %172 : vector<8x1xf32>
    %174 = vector.broadcast %173 : vector<8x1xf32> to vector<8x128xf32>
    %175 = arith.subf %169, %174 : vector<8x128xf32>
    %c0_35 = arith.constant 0 : index
    %c0_36 = arith.constant 0 : index
    %176 = vector.load %arg4[%c0_35, %c0_36] : memref<8x128xf32, #tpu.memory_space<vmem>>, vector<8x128xf32>
    tpu.vector_store %arg4[%c0_35, %c0_36], %175 {strides = array<i32>} : memref<8x128xf32, #tpu.memory_space<vmem>>, vector<8x128xf32>,
    return
  }
}

</mosaic_0001>

<bundles_post_ra>
// kernel: tpu_custom_call.1
= control target key start
LH: loop header
LB: loop body
LE: loop exit
PB: predicated region body
PF: predicated region fallthrough
CT: control target
= control target key end

     0   :  { %9 = vsyncpa [#allocation3], 0  ;;  %s5862_s0 = inlined_call_operand.hbm [shape: f32[7,8,128], index: 0, kind: input, shape index: {}]   ;;  %s5863_s1 = inlined_call_operand.hbm [shape: f32[32,128], index: 1, kind: input, shape index: {}]   ;;  %s5864_s2 = inlined_call_operand.hbm [shape: f32[32,128], index: 2, kind: input, shape index: {}]   ;;  %s5865_s3 = inlined_call_operand.vmem [shape: f32[1,128], index: 3, kind: input, shape index: {}]   ;;  %s5866_s4 = inlined_call_operand.hbm [shape: f32[8,128], index: 4, kind: output, shape index: {}]  }
   0x1   :  { %10 = vsyncpa [#allocation6], 0 }
   0x2   :  { %11 = vsyncpa [#allocation4], 0  ;;  %s5372_s15 = smov [#allocation5]   ;;  %s5373_s17 = smov [#allocation2]  }
   0x3   :  { %s29_s16 = sshll.u32 %s5372_s15, 4  ;;  %s17_s18 = sshll.u32 %s5373_s17, 4  ;;  %s30_s16 = int_to_ptr.vmem [resolvable:$true] %s29_s16  ;;  %s5410_s18 = int_to_ptr.vmem [resolvable:$true] %s17_s18 }
   0x4   :  { %s5278_s21 = scalar_lea.hbm %s5863_s1, 512 }
   0x5   :  { %p5279_p0 = scmp.ne.s32.totalorder %s5863_s1, %s5278_s21  ;;  %p5282_p1 = scmp.lt.u32.totalorder %s5278_s21, %s5863_s1 }
   0x7   :  { %p5284_p2 = pnand %p5282_p1, %p5279_p0 }
   0x9   :  { %5287 = shalt.err (!%p5284_p2)
}
   0xa   :  { %s5288_s26 = scalar_lea.vmem %s30_s16, 512  ;;  %p5293_p4 = scmp.lt.s32.totalorder %s30_s16, %s30_s16 }
   0xb   :  { %p5289_p3 = scmp.ne.s32.totalorder %s30_s16, %s5288_s26  ;;  %p5294_p5 = scmp.lt.s32.totalorder %s5288_s26, %s5288_s26 }
   0xd   :  { %p5295_p6 = por %p5294_p5, %p5293_p4 }
   0xf   :  { %p5296_p7 = pnand %p5295_p6, %p5289_p3 }
  0x11   :  { %5299 = shalt.err (!%p5296_p7)
}
  0x12   :  { %s5374_s27 = smov 128   ;;  %s5375_s28 = smov 8  }
  0x13   :  { %35 = dma.hbm_to_vmem [thread:$0]  %s5863_s1, 512, %s30_s16, [#allocation6], %s5374_s27, %s5374_s27, %s5375_s28  }
  0x14   :  { %s5300_s7 = scalar_lea.hbm %s5862_s0, 896 }
  0x15   :  { %p5301_p8 = scmp.ne.s32.totalorder %s5862_s0, %s5300_s7  ;;  %p5304_p9 = scmp.lt.u32.totalorder %s5300_s7, %s5862_s0 }
  0x17   :  { %p5306_p10 = pnand %p5304_p9, %p5301_p8 }
  0x19   :  { %5309 = shalt.err (!%p5306_p10)
}
  0x1a   :  { %s5310_s12 = scalar_lea.vmem %s5410_s18, 896  ;;  %p5315_p12 = scmp.lt.s32.totalorder %s5410_s18, %s5410_s18 }
  0x1b   :  { %p5311_p11 = scmp.ne.s32.totalorder %s5410_s18, %s5310_s12  ;;  %p5316_p13 = scmp.lt.s32.totalorder %s5310_s12, %s5310_s12 }
  0x1d   :  { %p5317_p0 = por %p5316_p13, %p5315_p12 }
  0x1f   :  { %p5318_p1 = pnand %p5317_p0, %p5311_p11 }
  0x21   :  { %5321 = shalt.err (!%p5318_p1)
}
  0x22   :  { %23 = dma.hbm_to_vmem [thread:$0]  %s5862_s0, 896, %s5410_s18, [#allocation3], %s5374_s27, %s5374_s27, %s5375_s28  }
  0x23   :  { %s5376_s14 = smov [#allocation7]   ;;  %s5322_s19 = scalar_lea.hbm %s5864_s2, 512 }
  0x24   :  { %s41_s15 = sshll.u32 %s5376_s14, 4  ;;  %p5323_p2 = scmp.ne.s32.totalorder %s5864_s2, %s5322_s19  ;;  %s42_s15 = int_to_ptr.vmem [resolvable:$true] %s41_s15 }
  0x25   :  { %p5326_p3 = scmp.lt.u32.totalorder %s5322_s19, %s5864_s2 }
  0x27   :  { %p5328_p4 = pnand %p5326_p3, %p5323_p2 }
  0x29   :  { %5331 = shalt.err (!%p5328_p4)
}
  0x2a   :  { %s5332_s24 = scalar_lea.vmem %s42_s15, 512  ;;  %p5337_p6 = scmp.lt.s32.totalorder %s42_s15, %s42_s15 }
  0x2b   :  { %p5333_p5 = scmp.ne.s32.totalorder %s42_s15, %s5332_s24  ;;  %p5338_p7 = scmp.lt.s32.totalorder %s5332_s24, %s5332_s24 }
  0x2d   :  { %p5339_p8 = por %p5338_p7, %p5337_p6 }
  0x2f   :  { %p5340_p9 = pnand %p5339_p8, %p5333_p5 }
  0x31   :  { %5343 = shalt.err (!%p5340_p9)
}
  0x32   :  { %47 = dma.hbm_to_vmem [thread:$0]  %s5864_s2, 512, %s42_s15, [#allocation6], %s5374_s27, %s5374_s27, %s5375_s28  }
  0x33   :  { %5366 = dma.done.wait [#allocation3], 896  }
  0x34   :  { %5367 = vsyncadd [#allocation3], 4294966400 }
  0x35   :  { %5368 = dma.done.wait [#allocation6], 1024  }
  0x36   :  { %5369 = vsyncadd [#allocation6], 4294966272  ;;  %v5377_v0 = vmov 0.0|0.0   ;;  %vm5378_vm0 = vmmov 0   ;;  %v5379_v1 = vmov 0.0   ;;  %v59_v2 = vld [vmem:[#allocation5] sm:$0xff]  ;;  %v63_v45 = vlaneseq }
  0x37   :  { %4934 = vmatprep.subr.bf16.mxu1 %v5377_v0  ;;  %4414 = vmatprep.mubr.msk.f32.mxu1 %vm5378_vm0, %v5379_v1  ;;  %v60_v3 = vld [vmem:[#allocation5 + $0x8] sm:$0xff]  ;;  %v61_v4 = vld [vmem:[#allocation5 + $0x10] sm:$0xff]  ;;  %v74_v5 = vand.u32 4294901760, %v59_v2  ;;  %v62_v7 = vld [vmem:[#allocation5 + $0x18] sm:$0xff]  ;;  %v5380_v54 = vmov 0.5   ;;  %s5381_s2 = smov 32  }
  0x38   :  { %4970 = vmatprep.subr.bf16.mxu0 %v5377_v0  ;;  %4480 = vmatprep.mubr.msk.f32.mxu0 %vm5378_vm0, %v5379_v1  ;;  %v77_v6 = vand.u32 4294901760, %v60_v3  ;;  %v80_v8 = vand.u32 4294901760, %v61_v4  ;;  %v83_v9 = vand.u32 4294901760, %v62_v7  ;;  %v64_v49 = vand.u32 127, %v63_v45  ;;  %v68_v50 = vld [vmem:[#allocation2] sm:$0xff]  ;;  %s5382_s25 = smov 96  }
  0x39   :  { %v154_v11 = vsub.f32 %v59_v2, %v74_v5  ;;  %s5383_s26 = smov 64   ;;  %vm69_vm2 = vcmask 261120   ;;  %s5384_s29 = smov [#allocation8]  }
  0x3a   :  { %v5468_v10 = vpack.c.bf16 %v77_v6, %v74_v5  ;;  %v161_v12 = vsub.f32 %v60_v3, %v77_v6  ;;  %v168_v13 = vsub.f32 %v61_v4, %v80_v8  ;;  %v175_v14 = vsub.f32 %v62_v7, %v83_v9  ;;  %s4155_s30 = sshll.u32 %s5384_s29, 4  ;;  %s4156_s30 = int_to_ptr.vmem [resolvable:$true] %s4155_s30 }
  0x3b   :  { %v5471_v15 = vpack.c.bf16 %v83_v9, %v80_v8  ;;  %v155_v16 = vand.u32 4294901760, %v154_v11  ;;  %vm65_vm1 = vcmp.lt.s32.totalorder %v64_v49, 32  ;;  %p5349_p11 = scmp.lt.s32.totalorder %s4156_s30, %s4156_s30 }
  0x3c   :  { %4936 = vmatpush3.bf16.msra.mxu1 %v5468_v10  ;;  %v162_v17 = vand.u32 4294901760, %v161_v12  ;;  %v169_v18 = vand.u32 4294901760, %v168_v13  ;;  %4972 = vmatpush3.bf16.msra.mxu0 %v5468_v10  ;;  %v176_v19 = vand.u32 4294901760, %v175_v14  ;;  %v5490_v30 = vpack.c.bf16 %v161_v12, %v154_v11 }
  0x3d   :  { %4937 = vmatprep.subr.bf16.mxu1 %v5377_v0  ;;  %4973 = vmatprep.subr.bf16.mxu0 %v5377_v0  ;;  %v156_v20 = vsub.f32 %v154_v11, %v155_v16  ;;  %v5495_v31 = vpack.c.bf16 %v175_v14, %v168_v13  ;;  %v5534_v55 = vsel %vm65_vm1, 1.0, %v5380_v54  ;;  %v5537_v59 = vsel %vm65_vm1, 0.0, %v5380_v54 }
  0x3e   :  { %v163_v21 = vsub.f32 %v161_v12, %v162_v17  ;;  %v170_v22 = vsub.f32 %v168_v13, %v169_v18  ;;  %v177_v23 = vsub.f32 %v175_v14, %v176_v19  ;;  %v5508_v32 = vpack.c.bf16 %v162_v17, %v155_v16 }
  0x3f   :  { %v157_v24 = vand.u32 4294901760, %v156_v20  ;;  %v5513_v33 = vpack.c.bf16 %v176_v19, %v169_v18 }
  0x40   :  { %4939 = vmatpush3.bf16.msra.mxu1 %v5471_v15  ;;  %v164_v25 = vand.u32 4294901760, %v163_v21  ;;  %v171_v26 = vand.u32 4294901760, %v170_v22  ;;  %4975 = vmatpush3.bf16.msra.mxu0 %v5471_v15  ;;  %v178_v27 = vand.u32 4294901760, %v177_v23 }
  0x41   :  { %4940 = vmatprep.subr.bf16.mxu1 %v5377_v0  ;;  %4982 = vmatprep.subr.bf16.mxu0 %v5377_v0 }
  0x42   :  { %v5480_v28 = vpack.c.bf16 %v164_v25, %v157_v24  ;;  %v5484_v29 = vpack.c.bf16 %v178_v27, %v171_v26 }
  0x43   :  { %4415 = vmatmul.mubr.f32.vlgmr.msra.gmra.mrb[0].mxu1 %v5379_v1 }
  0x44   :  { %4942 = vmatpush3.bf16.msra.mxu1 %v5480_v28  ;;  %4425 = vmatprep.mubr.msk.f32.mxu1 %vm5378_vm0, %v5379_v1 }
  0x45   :  { %4943 = vmatprep.subr.bf16.mxu1 %v5377_v0 }
  0x48   :  { %4945 = vmatpush3.bf16.msra.mxu1 %v5484_v29 }
  0x49   :  { %4946 = vmatprep.subr.bf16.mxu1 %v5377_v0 }
  0x4b   :  { %4426 = vmatmul.mubr.f32.vlgmr.msra.gmra.mrb[2].mxu1 %v5379_v1 }
  0x4c   :  { %4948 = vmatpush3.bf16.msra.mxu1 %v5490_v30  ;;  %4436 = vmatprep.mubr.msk.f32.mxu1 %vm5378_vm0, %v5379_v1 }
  0x4d   :  { %4949 = vmatprep.subr.bf16.mxu1 %v5377_v0 }
  0x50   :  { %4951 = vmatpush3.bf16.msra.mxu1 %v5495_v31 }
  0x51   :  { %4952 = vmatprep.subr.bf16.mxu1 %v5377_v0 }
  0x53   :  { %4437 = vmatmul.mubr.f32.vlgmr.msra.gmra.mrb[4].mxu1 %v5379_v1 }
  0x54   :  { %4954 = vmatpush3.bf16.msra.mxu1 %v5468_v10  ;;  %4447 = vmatprep.mubr.msk.f32.mxu1 %vm5378_vm0, %v5379_v1 }
  0x55   :  { %4955 = vmatprep.subr.bf16.mxu1 %v5377_v0 }
  0x58   :  { %4957 = vmatpush3.bf16.msra.mxu1 %v5471_v15 }
  0x59   :  { %4958 = vmatprep.subr.bf16.mxu1 %v5377_v0 }
  0x5b   :  { %4448 = vmatmul.mubr.f32.vlgmr.msra.gmra.mrb[6].mxu1 %v5379_v1 }
  0x5c   :  { %4960 = vmatpush3.bf16.msra.mxu1 %v5508_v32  ;;  %4458 = vmatprep.mubr.msk.f32.mxu1 %vm5378_vm0, %v5379_v1 }
  0x5d   :  { %4961 = vmatprep.subr.bf16.mxu1 %v5377_v0 }
  0x60   :  { %4963 = vmatpush3.bf16.msra.mxu1 %v5513_v33 }
  0x61   :  { %4964 = vmatprep.subr.bf16.mxu1 %v5377_v0 }
  0x63   :  { %4459 = vmatmul.mubr.f32.vlgmr.msra.gmra.mrb[8].mxu1 %v5379_v1 }
  0x64   :  { %4966 = vmatpush3.bf16.msra.mxu1 %v5468_v10  ;;  %4469 = vmatprep.mubr.msk.f32.mxu1 %vm5378_vm0, %v5379_v1 }
  0x65   :  { %4967 = vmatprep.subr.bf16.mxu1 %v5377_v0 }
  0x68   :  { %4969 = vmatpush3.bf16.msra.mxu1 %v5471_v15 }
  0x69   :  { %4976 = vmatprep.subr.bf16.mxu1 %v5377_v0 }
  0x6b   :  { %4470 = vmatmul.mubr.f32.vlgmr.msra.gmra.mrb[10].mxu1 %v5379_v1 }
  0x6c   :  { %4978 = vmatpush3.bf16.msra.mxu1 %v5480_v28  ;;  %4491 = vmatprep.mubr.msk.f32.mxu1 %vm5378_vm0, %v5379_v1 }
  0x6d   :  { %4979 = vmatprep.subr.bf16.mxu1 %v5377_v0 }
  0x70   :  { %4981 = vmatpush3.bf16.msra.mxu1 %v5484_v29 }
  0x71   :  { %4988 = vmatprep.subr.bf16.mxu1 %v5377_v0 }
 0x116   :  { %v148_v34 = vpop.f32.mrb[0].mxu1 }
 0x117   :  { %v4416_v35 = vpop.f32.mrb[1].mxu1 }
 0x11e   :  { %v239_v36 = vpop.f32.mrb[2].mxu1 }
 0x11f   :  { %v240_v37 = vadd.f32 %v239_v36, %v148_v34  ;;  %v4427_v38 = vpop.f32.mrb[3].mxu1 }
 0x120   :  { %v580_v38 = vld [vmem:[#allocation2 + $0x8] sm:$0xff] }
 0x126   :  { %v319_v39 = vpop.f32.mrb[4].mxu1 }
 0x127   :  { %v320_v40 = vadd.f32 %v319_v39, %v240_v37  ;;  %v4438_v41 = vpop.f32.mrb[5].mxu1 }
 0x12e   :  { %v396_v42 = vpop.f32.mrb[6].mxu1 }
 0x12f   :  { %v397_v43 = vadd.f32 %v396_v42, %v320_v40  ;;  %v4449_v44 = vpop.f32.mrb[7].mxu1 }
 0x136   :  { %v479_v46 = vpop.f32.mrb[8].mxu1 }
 0x137   :  { %v480_v47 = vadd.f32 %v479_v46, %v397_v43  ;;  %v4460_v48 = vpop.f32.mrb[9].mxu1 }
 0x13e   :  { %v554_v51 = vpop.f32.mrb[10].mxu1 }
 0x13f   :  { %v555_v52 = vadd.f32 %v554_v51, %v480_v47  ;;  %v4471_v53 = vpop.f32.mrb[11].mxu1 }
 0x141   :  { %v558_v56 = vadd.f32 %v555_v52, %v68_v50 }
 0x143   :  { %v559_v57 = vmul.f32 %v558_v56, %v5534_v55 }
 0x145   :  { %5246 = vtanh.f32 %v559_v57 }
 0x14f   :  { %v5247_v58 = vpop.eup %5246 }
 0x150   :  { %v561_v60 = vmul.f32 %v5247_v58, %v5534_v55 }
 0x152   :  { %v562_v61 = vadd.f32 %v561_v60, %v5537_v59 }
 0x154   :  { %575 = vrot.lane.b32.xlu1 %v562_v61, %s5381_s2  ;;  %564 = vrot.lane.b32.xlu0 %v562_v61, %s5382_s25  ;;  %v568_v62 = vmul.f32 0.0, %v562_v61 }
 0x158   :  { %570 = vrot.lane.b32.xlu0 %v568_v62, %s5383_s26 }
 0x1c6   :  { %v565_v63 = vpop.permute.xlu0 %564  ;;  %v576_v6 = vpop.permute.xlu1 %575 }
 0x1c7   :  { %v567_v2 = vmul.f32 %v565_v63, %v562_v61 }
 0x1ca   :  { %v571_v3 = vpop.permute.xlu0 %570 }
 0x1cb   :  { %v5544_v4 = vadd.f32 %v571_v3, %v567_v2 }
 0x1cd   :  { %5248 = vtanh.f32 %v5544_v4 }
 0x1d7   :  { %v5249_v5 = vpop.eup %5248 }
 0x1d8   :  { %v578_v7 = vmul.f32 %v5249_v5, %v576_v6 }
 0x1da   :  { %v582_v8 = vsel %vm69_vm2, %v578_v7, 0 }
 0x1db   :  { %v653_v9 = vand.u32 4294901760, %v582_v8 }
 0x1dd   :  { %v654_v11 = vsub.f32 %v582_v8, %v653_v9  ;;  %4492 = vmatmul.mubr.f32.vlgmr.msra.gmra.mrb[12].mxu1 %v653_v9 }
 0x1de   :  { %4990 = vmatpush3.bf16.msra.mxu1 %v5468_v10  ;;  %4513 = vmatprep.mubr.msk.f32.mxu1 %vm5378_vm0, %v5379_v1 }
 0x1df   :  { %4991 = vmatprep.subr.bf16.mxu1 %v5377_v0  ;;  %v655_v12 = vand.u32 4294901760, %v654_v11 }
 0x1e1   :  { %v656_v13 = vsub.f32 %v654_v11, %v655_v12 }
 0x1e2   :  { %4993 = vmatpush3.bf16.msra.mxu1 %v5471_v15 }
 0x1e3   :  { %5000 = vmatprep.subr.bf16.mxu1 %v5377_v0  ;;  %v657_v14 = vand.u32 4294901760, %v656_v13 }
 0x1e5   :  { %4514 = vmatmul.mubr.f32.vlgmr.msra.gmra.mrb[14].mxu1 %v655_v12  ;;  %4481 = vmatmul.mubr.f32.vlgmr.msra.gmra.mrb[0].mxu0 %v657_v14 }
 0x1e6   :  { %4984 = vmatpush3.bf16.msra.mxu0 %v5490_v30  ;;  %5002 = vmatpush3.bf16.msra.mxu1 %v5468_v10 }
 0x1e7   :  { %4985 = vmatprep.subr.bf16.mxu0 %v5377_v0  ;;  %5003 = vmatprep.subr.bf16.mxu1 %v5377_v0 }
 0x1e8   :  { %4502 = vmatprep.mubr.msk.f32.mxu0 %vm5378_vm0, %v5379_v1  ;;  %4535 = vmatprep.mubr.msk.f32.mxu1 %vm5378_vm0, %v5379_v1 }
 0x1ea   :  { %4987 = vmatpush3.bf16.msra.mxu0 %v5495_v31  ;;  %5005 = vmatpush3.bf16.msra.mxu1 %v5471_v15 }
 0x1eb   :  { %4994 = vmatprep.subr.bf16.mxu0 %v5377_v0  ;;  %5012 = vmatprep.subr.bf16.mxu1 %v5377_v0 }
 0x1ed   :  { %4503 = vmatmul.mubr.f32.vlgmr.msra.gmra.mrb[2].mxu0 %v654_v11  ;;  %4536 = vmatmul.mubr.f32.vlgmr.msra.gmra.mrb[16].mxu1 %v653_v9 }
 0x1ee   :  { %4996 = vmatpush3.bf16.msra.mxu0 %v5508_v32  ;;  %4524 = vmatprep.mubr.msk.f32.mxu0 %vm5378_vm0, %v5379_v1 }
 0x1ef   :  { %4997 = vmatprep.subr.bf16.mxu0 %v5377_v0  ;;  %5014 = vmatpush3.bf16.msra.mxu1 %v5480_v28 }
 0x1f0   :  { %5015 = vmatprep.subr.bf16.mxu1 %v5377_v0  ;;  %4557 = vmatprep.mubr.msk.f32.mxu1 %vm5378_vm0, %v5379_v1 }
 0x1f2   :  { %4999 = vmatpush3.bf16.msra.mxu0 %v5513_v33 }
 0x1f3   :  { %5017 = vmatpush3.bf16.msra.mxu1 %v5484_v29  ;;  %5006 = vmatprep.subr.bf16.mxu0 %v5377_v0 }
 0x1f4   :  { %5024 = vmatprep.subr.bf16.mxu1 %v5377_v0 }
 0x1f5   :  { %4525 = vmatmul.mubr.f32.vlgmr.msra.gmra.mrb[4].mxu0 %v653_v9 }
 0x1f6   :  { %5008 = vmatpush3.bf16.msra.mxu0 %v5468_v10  ;;  %4546 = vmatprep.mubr.msk.f32.mxu0 %vm5378_vm0, %v5379_v1 }
 0x1f7   :  { %5009 = vmatprep.subr.bf16.mxu0 %v5377_v0 }
 0x1fa   :  { %5011 = vmatpush3.bf16.msra.mxu0 %v5471_v15 }
 0x1fb   :  { %5018 = vmatprep.subr.bf16.mxu0 %v5377_v0 }
 0x2b0   :  { %v750_v16 = vpop.f32.mrb[12].mxu1 }
 0x2b1   :  { %v4493_v17 = vpop.f32.mrb[13].mxu1 }
 0x2b2   :  { %v1090_v17 = vld [vmem:[#allocation2 + $0x10] sm:$0xff] }
 0x2b8   :  { %v907_v18 = vpop.f32.mrb[14].mxu1  ;;  %v659_v19 = vpop.f32.mrb[0].mxu0 }
 0x2b9   :  { %v751_v20 = vadd.f32 %v750_v16, %v659_v19  ;;  %v4515_v21 = vpop.f32.mrb[15].mxu1  ;;  %v4482_v22 = vpop.f32.mrb[1].mxu0 }
 0x2c0   :  { %v830_v23 = vpop.f32.mrb[2].mxu0  ;;  %v1065_v24 = vpop.f32.mrb[16].mxu1 }
 0x2c1   :  { %v831_v25 = vadd.f32 %v830_v23, %v751_v20  ;;  %v4504_v26 = vpop.f32.mrb[3].mxu0  ;;  %v4537_v27 = vpop.f32.mrb[17].mxu1 }
 0x2c3   :  { %v908_v34 = vadd.f32 %v907_v18, %v831_v25 }
 0x2c8   :  { %v990_v35 = vpop.f32.mrb[4].mxu0 }
 0x2c9   :  { %v991_v36 = vadd.f32 %v990_v35, %v908_v34  ;;  %v4526_v37 = vpop.f32.mrb[5].mxu0 }
 0x2cb   :  { %v1066_v39 = vadd.f32 %v1065_v24, %v991_v36 }
 0x2cd   :  { %v1069_v40 = vadd.f32 %v1066_v39, %v580_v38 }
 0x2cf   :  { %v1070_v41 = vmul.f32 %v1069_v40, %v5534_v55 }
 0x2d1   :  { %5250 = vtanh.f32 %v1070_v41 }
 0x2db   :  { %v5251_v42 = vpop.eup %5250 }
 0x2dc   :  { %v1072_v43 = vmul.f32 %v5251_v42, %v5534_v55 }
 0x2de   :  { %v1073_v44 = vadd.f32 %v1072_v43, %v5537_v59 }
 0x2e0   :  { %1079 = vrot.lane.b32.xlu0 %v1073_v44, %s5383_s26  ;;  %1075 = vrot.lane.b32.xlu1 %v1073_v44, %s5382_s25 }
 0x2e4   :  { %1085 = vrot.lane.b32.xlu1 %v1073_v44, %s5381_s2 }
 0x352   :  { %v1080_v45 = vpop.permute.xlu0 %1079  ;;  %v1076_v46 = vpop.permute.xlu1 %1075 }
 0x353   :  { %v1082_v47 = vmul.f32 %v1080_v45, %v5544_v4  ;;  %v1078_v48 = vmul.f32 %v1076_v46, %v1073_v44 }
 0x355   :  { %v5591_v49 = vadd.f32 %v1082_v47, %v1078_v48 }
 0x356   :  { %v1086_v51 = vpop.permute.xlu1 %1085 }
 0x357   :  { %5252 = vtanh.f32 %v5591_v49 }
 0x361   :  { %v5253_v50 = vpop.eup %5252 }
 0x362   :  { %v1088_v52 = vmul.f32 %v5253_v50, %v1086_v51 }
 0x364   :  { %v1092_v53 = vsel %vm69_vm2, %v1088_v52, 0 }
 0x365   :  { %v1163_v54 = vand.u32 4294901760, %v1092_v53 }
 0x367   :  { %v1164_v56 = vsub.f32 %v1092_v53, %v1163_v54  ;;  %4558 = vmatmul.mubr.f32.vlgmr.msra.gmra.mrb[18].mxu1 %v1163_v54 }
 0x368   :  { %5026 = vmatpush3.bf16.msra.mxu1 %v5468_v10  ;;  %4579 = vmatprep.mubr.msk.f32.mxu1 %vm5378_vm0, %v5379_v1 }
 0x369   :  { %5027 = vmatprep.subr.bf16.mxu1 %v5377_v0  ;;  %v1165_v57 = vand.u32 4294901760, %v1164_v56 }
 0x36b   :  { %v1166_v58 = vsub.f32 %v1164_v56, %v1165_v57 }
 0x36c   :  { %5029 = vmatpush3.bf16.msra.mxu1 %v5471_v15 }
 0x36d   :  { %5036 = vmatprep.subr.bf16.mxu1 %v5377_v0  ;;  %v1167_v60 = vand.u32 4294901760, %v1166_v58 }
 0x36f   :  { %4580 = vmatmul.mubr.f32.vlgmr.msra.gmra.mrb[20].mxu1 %v1165_v57  ;;  %4547 = vmatmul.mubr.f32.vlgmr.msra.gmra.mrb[6].mxu0 %v1167_v60 }
 0x370   :  { %5020 = vmatpush3.bf16.msra.mxu0 %v5490_v30  ;;  %5038 = vmatpush3.bf16.msra.mxu1 %v5468_v10 }
 0x371   :  { %5021 = vmatprep.subr.bf16.mxu0 %v5377_v0  ;;  %5039 = vmatprep.subr.bf16.mxu1 %v5377_v0 }
 0x372   :  { %4568 = vmatprep.mubr.msk.f32.mxu0 %vm5378_vm0, %v5379_v1  ;;  %4601 = vmatprep.mubr.msk.f32.mxu1 %vm5378_vm0, %v5379_v1 }
 0x374   :  { %5023 = vmatpush3.bf16.msra.mxu0 %v5495_v31  ;;  %5041 = vmatpush3.bf16.msra.mxu1 %v5471_v15 }
 0x375   :  { %5030 = vmatprep.subr.bf16.mxu0 %v5377_v0  ;;  %5048 = vmatprep.subr.bf16.mxu1 %v5377_v0 }
 0x377   :  { %4569 = vmatmul.mubr.f32.vlgmr.msra.gmra.mrb[8].mxu0 %v1164_v56  ;;  %4602 = vmatmul.mubr.f32.vlgmr.msra.gmra.mrb[22].mxu1 %v1163_v54 }
 0x378   :  { %5032 = vmatpush3.bf16.msra.mxu0 %v5508_v32  ;;  %4590 = vmatprep.mubr.msk.f32.mxu0 %vm5378_vm0, %v5379_v1 }
 0x379   :  { %5033 = vmatprep.subr.bf16.mxu0 %v5377_v0  ;;  %5050 = vmatpush3.bf16.msra.mxu1 %v5480_v28 }
 0x37a   :  { %5051 = vmatprep.subr.bf16.mxu1 %v5377_v0  ;;  %4623 = vmatprep.mubr.msk.f32.mxu1 %vm5378_vm0, %v5379_v1 }
 0x37c   :  { %5035 = vmatpush3.bf16.msra.mxu0 %v5513_v33 }
 0x37d   :  { %5053 = vmatpush3.bf16.msra.mxu1 %v5484_v29  ;;  %5042 = vmatprep.subr.bf16.mxu0 %v5377_v0 }
 0x37e   :  { %5060 = vmatprep.subr.bf16.mxu1 %v5377_v0 }
 0x37f   :  { %4591 = vmatmul.mubr.f32.vlgmr.msra.gmra.mrb[10].mxu0 %v1163_v54 }
 0x380   :  { %5044 = vmatpush3.bf16.msra.mxu0 %v5468_v10  ;;  %4612 = vmatprep.mubr.msk.f32.mxu0 %vm5378_vm0, %v5379_v1 }
 0x381   :  { %5045 = vmatprep.subr.bf16.mxu0 %v5377_v0 }
 0x384   :  { %5047 = vmatpush3.bf16.msra.mxu0 %v5471_v15 }
 0x385   :  { %5054 = vmatprep.subr.bf16.mxu0 %v5377_v0 }
 0x43a   :  { %v1260_v61 = vpop.f32.mrb[18].mxu1 }
 0x43b   :  { %v4559_v62 = vpop.f32.mrb[19].mxu1 }
 0x43c   :  { %v1600_v62 = vld [vmem:[#allocation2 + $0x18] sm:$0xff] }
 0x442   :  { %v1417_v63 = vpop.f32.mrb[20].mxu1  ;;  %v1169_v2 = vpop.f32.mrb[6].mxu0 }
 0x443   :  { %v1261_v3 = vadd.f32 %v1260_v61, %v1169_v2  ;;  %v4581_v4 = vpop.f32.mrb[21].mxu1  ;;  %v4548_v5 = vpop.f32.mrb[7].mxu0 }
 0x44a   :  { %v1340_v6 = vpop.f32.mrb[8].mxu0  ;;  %v1575_v7 = vpop.f32.mrb[22].mxu1 }
 0x44b   :  { %v1341_v8 = vadd.f32 %v1340_v6, %v1261_v3  ;;  %v4570_v9 = vpop.f32.mrb[9].mxu0  ;;  %v4603_v11 = vpop.f32.mrb[23].mxu1 }
 0x44d   :  { %v1418_v12 = vadd.f32 %v1417_v63, %v1341_v8 }
 0x452   :  { %v1500_v13 = vpop.f32.mrb[10].mxu0 }
 0x453   :  { %v1501_v14 = vadd.f32 %v1500_v13, %v1418_v12  ;;  %v4592_v16 = vpop.f32.mrb[11].mxu0 }
 0x455   :  { %v1576_v18 = vadd.f32 %v1575_v7, %v1501_v14 }
 0x457   :  { %v1579_v19 = vadd.f32 %v1576_v18, %v1090_v17 }
 0x459   :  { %v1580_v20 = vmul.f32 %v1579_v19, %v5534_v55 }
 0x45b   :  { %5254 = vtanh.f32 %v1580_v20 }
 0x465   :  { %v5255_v21 = vpop.eup %5254 }
 0x466   :  { %v1582_v22 = vmul.f32 %v5255_v21, %v5534_v55 }
 0x468   :  { %v1583_v23 = vadd.f32 %v1582_v22, %v5537_v59 }
 0x46a   :  { %1589 = vrot.lane.b32.xlu1 %v1583_v23, %s5383_s26  ;;  %1585 = vrot.lane.b32.xlu0 %v1583_v23, %s5382_s25 }
 0x46e   :  { %1595 = vrot.lane.b32.xlu0 %v1583_v23, %s5381_s2 }
 0x4dc   :  { %v1590_v24 = vpop.permute.xlu1 %1589  ;;  %v1586_v25 = vpop.permute.xlu0 %1585 }
 0x4dd   :  { %v1592_v26 = vmul.f32 %v1590_v24, %v5591_v49  ;;  %v1588_v27 = vmul.f32 %v1586_v25, %v1583_v23 }
 0x4df   :  { %v5638_v34 = vadd.f32 %v1592_v26, %v1588_v27 }
 0x4e0   :  { %v1596_v36 = vpop.permute.xlu0 %1595 }
 0x4e1   :  { %5256 = vtanh.f32 %v5638_v34 }
 0x4eb   :  { %v5257_v35 = vpop.eup %5256 }
 0x4ec   :  { %v1598_v37 = vmul.f32 %v5257_v35, %v1596_v36 }
 0x4ee   :  { %v1602_v38 = vsel %vm69_vm2, %v1598_v37, 0 }
 0x4ef   :  { %v1673_v39 = vand.u32 4294901760, %v1602_v38 }
 0x4f1   :  { %v1674_v40 = vsub.f32 %v1602_v38, %v1673_v39  ;;  %4624 = vmatmul.mubr.f32.vlgmr.msra.gmra.mrb[24].mxu1 %v1673_v39 }
 0x4f2   :  { %5062 = vmatpush3.bf16.msra.mxu1 %v5468_v10  ;;  %4645 = vmatprep.mubr.msk.f32.mxu1 %vm5378_vm0, %v5379_v1 }
 0x4f3   :  { %5063 = vmatprep.subr.bf16.mxu1 %v5377_v0  ;;  %v1675_v41 = vand.u32 4294901760, %v1674_v40 }
 0x4f5   :  { %v1676_v42 = vsub.f32 %v1674_v40, %v1675_v41 }
 0x4f6   :  { %5065 = vmatpush3.bf16.msra.mxu1 %v5471_v15 }
 0x4f7   :  { %5072 = vmatprep.subr.bf16.mxu1 %v5377_v0  ;;  %v1677_v43 = vand.u32 4294901760, %v1676_v42 }
 0x4f9   :  { %4646 = vmatmul.mubr.f32.vlgmr.msra.gmra.mrb[26].mxu1 %v1675_v41  ;;  %4613 = vmatmul.mubr.f32.vlgmr.msra.gmra.mrb[12].mxu0 %v1677_v43 }
 0x4fa   :  { %5056 = vmatpush3.bf16.msra.mxu0 %v5490_v30  ;;  %5074 = vmatpush3.bf16.msra.mxu1 %v5468_v10 }
 0x4fb   :  { %5057 = vmatprep.subr.bf16.mxu0 %v5377_v0  ;;  %5075 = vmatprep.subr.bf16.mxu1 %v5377_v0 }
 0x4fc   :  { %4634 = vmatprep.mubr.msk.f32.mxu0 %vm5378_vm0, %v5379_v1  ;;  %4667 = vmatprep.mubr.msk.f32.mxu1 %vm5378_vm0, %v5379_v1 }
 0x4fe   :  { %5059 = vmatpush3.bf16.msra.mxu0 %v5495_v31  ;;  %5077 = vmatpush3.bf16.msra.mxu1 %v5471_v15 }
 0x4ff   :  { %5066 = vmatprep.subr.bf16.mxu0 %v5377_v0  ;;  %5084 = vmatprep.subr.bf16.mxu1 %v5377_v0 }
 0x501   :  { %4635 = vmatmul.mubr.f32.vlgmr.msra.gmra.mrb[14].mxu0 %v1674_v40  ;;  %4668 = vmatmul.mubr.f32.vlgmr.msra.gmra.mrb[28].mxu1 %v1673_v39 }
 0x502   :  { %5068 = vmatpush3.bf16.msra.mxu0 %v5508_v32  ;;  %4656 = vmatprep.mubr.msk.f32.mxu0 %vm5378_vm0, %v5379_v1 }
 0x503   :  { %5069 = vmatprep.subr.bf16.mxu0 %v5377_v0  ;;  %5086 = vmatpush3.bf16.msra.mxu1 %v5480_v28 }
 0x504   :  { %5087 = vmatprep.subr.bf16.mxu1 %v5377_v0  ;;  %4689 = vmatprep.mubr.msk.f32.mxu1 %vm5378_vm0, %v5379_v1 }
 0x506   :  { %5071 = vmatpush3.bf16.msra.mxu0 %v5513_v33 }
 0x507   :  { %5089 = vmatpush3.bf16.msra.mxu1 %v5484_v29  ;;  %5078 = vmatprep.subr.bf16.mxu0 %v5377_v0 }
 0x508   :  { %5096 = vmatprep.subr.bf16.mxu1 %v5377_v0 }
 0x509   :  { %4657 = vmatmul.mubr.f32.vlgmr.msra.gmra.mrb[16].mxu0 %v1673_v39 }
 0x50a   :  { %5080 = vmatpush3.bf16.msra.mxu0 %v5468_v10  ;;  %4678 = vmatprep.mubr.msk.f32.mxu0 %vm5378_vm0, %v5379_v1 }
 0x50b   :  { %5081 = vmatprep.subr.bf16.mxu0 %v5377_v0 }
 0x50e   :  { %5083 = vmatpush3.bf16.msra.mxu0 %v5471_v15 }
 0x50f   :  { %5090 = vmatprep.subr.bf16.mxu0 %v5377_v0 }
 0x5c4   :  { %v1770_v44 = vpop.f32.mrb[24].mxu1 }
 0x5c5   :  { %v4625_v45 = vpop.f32.mrb[25].mxu1 }
 0x5c6   :  { %v2110_v45 = vld [vmem:[#allocation2 + $0x20] sm:$0xff] }
 0x5cc   :  { %v1927_v46 = vpop.f32.mrb[26].mxu1  ;;  %v1679_v47 = vpop.f32.mrb[12].mxu0 }
 0x5cd   :  { %v1771_v48 = vadd.f32 %v1770_v44, %v1679_v47  ;;  %v4647_v49 = vpop.f32.mrb[27].mxu1  ;;  %v4614_v50 = vpop.f32.mrb[13].mxu0 }
 0x5d4   :  { %v1850_v51 = vpop.f32.mrb[14].mxu0  ;;  %v2085_v52 = vpop.f32.mrb[28].mxu1 }
 0x5d5   :  { %v1851_v53 = vadd.f32 %v1850_v51, %v1771_v48  ;;  %v4636_v54 = vpop.f32.mrb[15].mxu0  ;;  %v4669_v56 = vpop.f32.mrb[29].mxu1 }
 0x5d7   :  { %v1928_v57 = vadd.f32 %v1927_v46, %v1851_v53 }
 0x5dc   :  { %v2010_v58 = vpop.f32.mrb[16].mxu0 }
 0x5dd   :  { %v2011_v60 = vadd.f32 %v2010_v58, %v1928_v57  ;;  %v4658_v61 = vpop.f32.mrb[17].mxu0 }
 0x5df   :  { %v2086_v63 = vadd.f32 %v2085_v52, %v2011_v60 }
 0x5e1   :  { %v2089_v2 = vadd.f32 %v2086_v63, %v1600_v62 }
 0x5e3   :  { %v2090_v3 = vmul.f32 %v2089_v2, %v5534_v55 }
 0x5e5   :  { %5258 = vtanh.f32 %v2090_v3 }
 0x5ef   :  { %v5259_v4 = vpop.eup %5258 }
 0x5f0   :  { %v2092_v5 = vmul.f32 %v5259_v4, %v5534_v55 }
 0x5f2   :  { %v2093_v6 = vadd.f32 %v2092_v5, %v5537_v59 }
 0x5f4   :  { %2099 = vrot.lane.b32.xlu0 %v2093_v6, %s5383_s26  ;;  %2095 = vrot.lane.b32.xlu1 %v2093_v6, %s5382_s25 }
 0x5f8   :  { %2105 = vrot.lane.b32.xlu1 %v2093_v6, %s5381_s2 }
 0x666   :  { %v2100_v7 = vpop.permute.xlu0 %2099  ;;  %v2096_v8 = vpop.permute.xlu1 %2095 }
 0x667   :  { %v2102_v9 = vmul.f32 %v2100_v7, %v5638_v34  ;;  %v2098_v11 = vmul.f32 %v2096_v8, %v2093_v6 }
 0x669   :  { %v5685_v12 = vadd.f32 %v2102_v9, %v2098_v11 }
 0x66a   :  { %v2106_v14 = vpop.permute.xlu1 %2105 }
 0x66b   :  { %5260 = vtanh.f32 %v5685_v12 }
 0x675   :  { %v5261_v13 = vpop.eup %5260 }
 0x676   :  { %v2108_v16 = vmul.f32 %v5261_v13, %v2106_v14 }
 0x678   :  { %v2112_v17 = vsel %vm69_vm2, %v2108_v16, 0 }
 0x679   :  { %v2183_v18 = vand.u32 4294901760, %v2112_v17 }
 0x67b   :  { %v2184_v19 = vsub.f32 %v2112_v17, %v2183_v18  ;;  %4690 = vmatmul.mubr.f32.vlgmr.msra.gmra.mrb[30].mxu1 %v2183_v18 }
 0x67c   :  { %5098 = vmatpush3.bf16.msra.mxu1 %v5468_v10  ;;  %4711 = vmatprep.mubr.msk.f32.mxu1 %vm5378_vm0, %v5379_v1 }
 0x67d   :  { %5099 = vmatprep.subr.bf16.mxu1 %v5377_v0  ;;  %v2185_v20 = vand.u32 4294901760, %v2184_v19 }
 0x67f   :  { %v2186_v21 = vsub.f32 %v2184_v19, %v2185_v20 }
 0x680   :  { %5101 = vmatpush3.bf16.msra.mxu1 %v5471_v15 }
 0x681   :  { %5108 = vmatprep.subr.bf16.mxu1 %v5377_v0  ;;  %v2187_v22 = vand.u32 4294901760, %v2186_v21 }
 0x683   :  { %4712 = vmatmul.mubr.f32.vlgmr.msra.gmra.mrb[32].mxu1 %v2185_v20  ;;  %4679 = vmatmul.mubr.f32.vlgmr.msra.gmra.mrb[18].mxu0 %v2187_v22  ;;  %v2620_v22 = vld [vmem:[#allocation2 + $0x28] sm:$0xff] }
 0x684   :  { %5092 = vmatpush3.bf16.msra.mxu0 %v5490_v30  ;;  %5110 = vmatpush3.bf16.msra.mxu1 %v5468_v10 }
 0x685   :  { %5093 = vmatprep.subr.bf16.mxu0 %v5377_v0  ;;  %5111 = vmatprep.subr.bf16.mxu1 %v5377_v0 }
 0x686   :  { %4700 = vmatprep.mubr.msk.f32.mxu0 %vm5378_vm0, %v5379_v1  ;;  %4733 = vmatprep.mubr.msk.f32.mxu1 %vm5378_vm0, %v5379_v1 }
 0x688   :  { %5095 = vmatpush3.bf16.msra.mxu0 %v5495_v31  ;;  %5113 = vmatpush3.bf16.msra.mxu1 %v5471_v15 }
 0x689   :  { %5102 = vmatprep.subr.bf16.mxu0 %v5377_v0  ;;  %5120 = vmatprep.subr.bf16.mxu1 %v5377_v0 }
 0x68b   :  { %4701 = vmatmul.mubr.f32.vlgmr.msra.gmra.mrb[20].mxu0 %v2184_v19  ;;  %4734 = vmatmul.mubr.f32.vlgmr.msra.gmra.mrb[34].mxu1 %v2183_v18 }
 0x68c   :  { %5104 = vmatpush3.bf16.msra.mxu0 %v5508_v32  ;;  %4722 = vmatprep.mubr.msk.f32.mxu0 %vm5378_vm0, %v5379_v1 }
 0x68d   :  { %5105 = vmatprep.subr.bf16.mxu0 %v5377_v0  ;;  %5122 = vmatpush3.bf16.msra.mxu1 %v5480_v28 }
 0x68e   :  { %5123 = vmatprep.subr.bf16.mxu1 %v5377_v0  ;;  %4755 = vmatprep.mubr.msk.f32.mxu1 %vm5378_vm0, %v5379_v1 }
 0x690   :  { %5107 = vmatpush3.bf16.msra.mxu0 %v5513_v33 }
 0x691   :  { %5125 = vmatpush3.bf16.msra.mxu1 %v5484_v29  ;;  %5114 = vmatprep.subr.bf16.mxu0 %v5377_v0 }
 0x692   :  { %5132 = vmatprep.subr.bf16.mxu1 %v5377_v0 }
 0x693   :  { %4723 = vmatmul.mubr.f32.vlgmr.msra.gmra.mrb[22].mxu0 %v2183_v18 }
 0x694   :  { %5116 = vmatpush3.bf16.msra.mxu0 %v5468_v10  ;;  %4744 = vmatprep.mubr.msk.f32.mxu0 %vm5378_vm0, %v5379_v1 }
 0x695   :  { %5117 = vmatprep.subr.bf16.mxu0 %v5377_v0 }
 0x698   :  { %5119 = vmatpush3.bf16.msra.mxu0 %v5471_v15 }
 0x699   :  { %5126 = vmatprep.subr.bf16.mxu0 %v5377_v0 }
 0x74e   :  { %v2280_v23 = vpop.f32.mrb[30].mxu1 }
 0x74f   :  { %v4691_v24 = vpop.f32.mrb[31].mxu1 }
 0x756   :  { %v2437_v25 = vpop.f32.mrb[32].mxu1  ;;  %v2189_v26 = vpop.f32.mrb[18].mxu0 }
 0x757   :  { %v2281_v27 = vadd.f32 %v2280_v23, %v2189_v26  ;;  %v4713_v34 = vpop.f32.mrb[33].mxu1  ;;  %v4680_v35 = vpop.f32.mrb[19].mxu0 }
 0x75e   :  { %v2360_v36 = vpop.f32.mrb[20].mxu0  ;;  %v2595_v37 = vpop.f32.mrb[34].mxu1 }
 0x75f   :  { %v2361_v38 = vadd.f32 %v2360_v36, %v2281_v27  ;;  %v4702_v39 = vpop.f32.mrb[21].mxu0  ;;  %v4735_v40 = vpop.f32.mrb[35].mxu1 }
 0x761   :  { %v2438_v41 = vadd.f32 %v2437_v25, %v2361_v38 }
 0x766   :  { %v2520_v42 = vpop.f32.mrb[22].mxu0 }
 0x767   :  { %v2521_v43 = vadd.f32 %v2520_v42, %v2438_v41  ;;  %v4724_v44 = vpop.f32.mrb[23].mxu0 }
 0x769   :  { %v2596_v46 = vadd.f32 %v2595_v37, %v2521_v43 }
 0x76b   :  { %v2599_v47 = vadd.f32 %v2596_v46, %v2110_v45 }
 0x76d   :  { %v2600_v48 = vmul.f32 %v2599_v47, %v5534_v55 }
 0x76f   :  { %5262 = vtanh.f32 %v2600_v48 }
 0x779   :  { %v5263_v49 = vpop.eup %5262 }
 0x77a   :  { %v2602_v50 = vmul.f32 %v5263_v49, %v5534_v55 }
 0x77c   :  { %v2603_v51 = vadd.f32 %v2602_v50, %v5537_v59 }
 0x77e   :  { %2609 = vrot.lane.b32.xlu1 %v2603_v51, %s5383_s26  ;;  %2605 = vrot.lane.b32.xlu0 %v2603_v51, %s5382_s25 }
 0x782   :  { %2615 = vrot.lane.b32.xlu0 %v2603_v51, %s5381_s2 }
 0x7f0   :  { %v2610_v52 = vpop.permute.xlu1 %2609  ;;  %v2606_v53 = vpop.permute.xlu0 %2605 }
 0x7f1   :  { %v2612_v54 = vmul.f32 %v2610_v52, %v5685_v12  ;;  %v2608_v56 = vmul.f32 %v2606_v53, %v2603_v51 }
 0x7f3   :  { %v5732_v57 = vadd.f32 %v2612_v54, %v2608_v56 }
 0x7f4   :  { %v2616_v60 = vpop.permute.xlu0 %2615 }
 0x7f5   :  { %5264 = vtanh.f32 %v5732_v57 }
 0x7ff   :  { %v5265_v58 = vpop.eup %5264 }
 0x800   :  { %v2618_v61 = vmul.f32 %v5265_v58, %v2616_v60 }
 0x802   :  { %v2622_v62 = vsel %vm69_vm2, %v2618_v61, 0  ;;  %v3130_v61 = vld [vmem:[#allocation2 + $0x30] sm:$0xff] }
 0x803   :  { %v2693_v63 = vand.u32 4294901760, %v2622_v62 }
 0x805   :  { %v2694_v2 = vsub.f32 %v2622_v62, %v2693_v63  ;;  %4756 = vmatmul.mubr.f32.vlgmr.msra.gmra.mrb[36].mxu1 %v2693_v63 }
 0x806   :  { %5134 = vmatpush3.bf16.msra.mxu1 %v5468_v10  ;;  %4777 = vmatprep.mubr.msk.f32.mxu1 %vm5378_vm0, %v5379_v1 }
 0x807   :  { %5135 = vmatprep.subr.bf16.mxu1 %v5377_v0  ;;  %v2695_v3 = vand.u32 4294901760, %v2694_v2 }
 0x809   :  { %v2696_v4 = vsub.f32 %v2694_v2, %v2695_v3 }
 0x80a   :  { %5137 = vmatpush3.bf16.msra.mxu1 %v5471_v15 }
 0x80b   :  { %5144 = vmatprep.subr.bf16.mxu1 %v5377_v0  ;;  %v2697_v5 = vand.u32 4294901760, %v2696_v4 }
 0x80d   :  { %4778 = vmatmul.mubr.f32.vlgmr.msra.gmra.mrb[38].mxu1 %v2695_v3  ;;  %4745 = vmatmul.mubr.f32.vlgmr.msra.gmra.mrb[24].mxu0 %v2697_v5 }
 0x80e   :  { %5128 = vmatpush3.bf16.msra.mxu0 %v5490_v30  ;;  %5146 = vmatpush3.bf16.msra.mxu1 %v5468_v10 }
 0x80f   :  { %5129 = vmatprep.subr.bf16.mxu0 %v5377_v0  ;;  %5147 = vmatprep.subr.bf16.mxu1 %v5377_v0 }
 0x810   :  { %4766 = vmatprep.mubr.msk.f32.mxu0 %vm5378_vm0, %v5379_v1  ;;  %4799 = vmatprep.mubr.msk.f32.mxu1 %vm5378_vm0, %v5379_v1 }
 0x812   :  { %5131 = vmatpush3.bf16.msra.mxu0 %v5495_v31  ;;  %5149 = vmatpush3.bf16.msra.mxu1 %v5471_v15 }
 0x813   :  { %5138 = vmatprep.subr.bf16.mxu0 %v5377_v0  ;;  %5156 = vmatprep.subr.bf16.mxu1 %v5377_v0 }
 0x815   :  { %4767 = vmatmul.mubr.f32.vlgmr.msra.gmra.mrb[26].mxu0 %v2694_v2  ;;  %4800 = vmatmul.mubr.f32.vlgmr.msra.gmra.mrb[40].mxu1 %v2693_v63 }
 0x816   :  { %5140 = vmatpush3.bf16.msra.mxu0 %v5508_v32  ;;  %4788 = vmatprep.mubr.msk.f32.mxu0 %vm5378_vm0, %v5379_v1 }
 0x817   :  { %5141 = vmatprep.subr.bf16.mxu0 %v5377_v0  ;;  %5158 = vmatpush3.bf16.msra.mxu1 %v5480_v28 }
 0x818   :  { %5159 = vmatprep.subr.bf16.mxu1 %v5377_v0  ;;  %4821 = vmatprep.mubr.msk.f32.mxu1 %vm5378_vm0, %v5379_v1 }
 0x81a   :  { %5143 = vmatpush3.bf16.msra.mxu0 %v5513_v33 }
 0x81b   :  { %5161 = vmatpush3.bf16.msra.mxu1 %v5484_v29  ;;  %5150 = vmatprep.subr.bf16.mxu0 %v5377_v0 }
 0x81c   :  { %5168 = vmatprep.subr.bf16.mxu1 %v5377_v0 }
 0x81d   :  { %4789 = vmatmul.mubr.f32.vlgmr.msra.gmra.mrb[28].mxu0 %v2693_v63 }
 0x81e   :  { %5152 = vmatpush3.bf16.msra.mxu0 %v5468_v10  ;;  %4810 = vmatprep.mubr.msk.f32.mxu0 %vm5378_vm0, %v5379_v1 }
 0x81f   :  { %5153 = vmatprep.subr.bf16.mxu0 %v5377_v0 }
 0x822   :  { %5155 = vmatpush3.bf16.msra.mxu0 %v5471_v15 }
 0x823   :  { %5162 = vmatprep.subr.bf16.mxu0 %v5377_v0 }
 0x8d8   :  { %v2790_v28 = vpop.f32.mrb[36].mxu1 }
 0x8d9   :  { %v4757_v6 = vpop.f32.mrb[37].mxu1 }
 0x8da   :  { %v3640_v6 = vld [vmem:[#allocation7 + $0x8] sm:$0xff] }
 0x8e0   :  { %v2947_v7 = vpop.f32.mrb[38].mxu1  ;;  %v2699_v29 = vpop.f32.mrb[24].mxu0 }
 0x8e1   :  { %v2791_v8 = vadd.f32 %v2790_v28, %v2699_v29  ;;  %v4779_v9 = vpop.f32.mrb[39].mxu1  ;;  %v4746_v11 = vpop.f32.mrb[25].mxu0  ;;  %v3639_v28 = vld [vmem:[#allocation7] sm:$0xff]  ;;  %v3657_v29 = vand.u32 4294901760, %v3640_v6 }
 0x8e3   :  { %v3741_v11 = vsub.f32 %v3640_v6, %v3657_v29 }
 0x8e8   :  { %v2870_v12 = vpop.f32.mrb[26].mxu0  ;;  %v3105_v13 = vpop.f32.mrb[40].mxu1 }
 0x8e9   :  { %v2871_v14 = vadd.f32 %v2870_v12, %v2791_v8  ;;  %v4768_v16 = vpop.f32.mrb[27].mxu0  ;;  %v4801_v17 = vpop.f32.mrb[41].mxu1  ;;  %v3641_v12 = vld [vmem:[#allocation7 + $0x10] sm:$0xff] }
 0x8ea   :  { %v3742_v16 = vand.u32 4294901760, %v3741_v11 }
 0x8eb   :  { %v2948_v18 = vadd.f32 %v2947_v7, %v2871_v14  ;;  %v3654_v7 = vand.u32 4294901760, %v3639_v28 }
 0x8ed   :  { %v5814_v8 = vpack.c.bf16 %v3657_v29, %v3654_v7  ;;  %v3734_v9 = vsub.f32 %v3639_v28, %v3654_v7 }
 0x8ef   :  { %v3735_v14 = vand.u32 4294901760, %v3734_v9 }
 0x8f0   :  { %v3030_v19 = vpop.f32.mrb[28].mxu0 }
 0x8f1   :  { %v3031_v20 = vadd.f32 %v3030_v19, %v2948_v18  ;;  %v4790_v21 = vpop.f32.mrb[29].mxu0 }
 0x8f2   :  { %v3743_v21 = vsub.f32 %v3741_v11, %v3742_v16 }
 0x8f3   :  { %v3106_v23 = vadd.f32 %v3105_v13, %v3031_v20  ;;  %v3642_v13 = vld [vmem:[#allocation7 + $0x18] sm:$0xff]  ;;  %v3736_v20 = vsub.f32 %v3734_v9, %v3735_v14 }
 0x8f5   :  { %v3109_v24 = vadd.f32 %v3106_v23, %v2620_v22  ;;  %v3737_v22 = vand.u32 4294901760, %v3736_v20 }
 0x8f7   :  { %v3110_v25 = vmul.f32 %v3109_v24, %v5534_v55 }
 0x8f9   :  { %5266 = vtanh.f32 %v3110_v25  ;;  %v3744_v25 = vand.u32 4294901760, %v3743_v21 }
 0x903   :  { %v5267_v26 = vpop.eup %5266 }
 0x904   :  { %v3112_v27 = vmul.f32 %v5267_v26, %v5534_v55 }
 0x906   :  { %v3113_v34 = vadd.f32 %v3112_v27, %v5537_v59 }
 0x908   :  { %3119 = vrot.lane.b32.xlu0 %v3113_v34, %s5383_s26  ;;  %3115 = vrot.lane.b32.xlu1 %v3113_v34, %s5382_s25 }
 0x90c   :  { %3125 = vrot.lane.b32.xlu1 %v3113_v34, %s5381_s2 }
 0x97a   :  { %v3120_v35 = vpop.permute.xlu0 %3119  ;;  %v3116_v36 = vpop.permute.xlu1 %3115 }
 0x97b   :  { %v3122_v37 = vmul.f32 %v3120_v35, %v5732_v57  ;;  %v3118_v38 = vmul.f32 %v3116_v36, %v3113_v34  ;;  %v5193_v34 = vpack.c.bf16 %v3744_v25, %v3737_v22 }
 0x97d   :  { %v5779_v39 = vadd.f32 %v3122_v37, %v3118_v38  ;;  %v5199_v38 = vpack.c.bf16 %v3741_v11, %v3734_v9 }
 0x97e   :  { %v3126_v41 = vpop.permute.xlu1 %3125 }
 0x97f   :  { %5268 = vtanh.f32 %v5779_v39 }
 0x989   :  { %v5269_v40 = vpop.eup %5268 }
 0x98a   :  { %v3128_v42 = vmul.f32 %v5269_v40, %v3126_v41  ;;  %v5211_v41 = vpack.c.bf16 %v3742_v16, %v3735_v14 }
 0x98c   :  { %v3132_v43 = vsel %vm69_vm2, %v3128_v42, 0 }
 0x98d   :  { %v3203_v44 = vand.u32 4294901760, %v3132_v43 }
 0x98f   :  { %v3204_v45 = vsub.f32 %v3132_v43, %v3203_v44  ;;  %4822 = vmatmul.mubr.f32.vlgmr.msra.gmra.mrb[42].mxu1 %v3203_v44 }
 0x990   :  { %5170 = vmatpush3.bf16.msra.mxu1 %v5468_v10  ;;  %4843 = vmatprep.mubr.msk.f32.mxu1 %vm5378_vm0, %v5379_v1 }
 0x991   :  { %5171 = vmatprep.subr.bf16.mxu1 %v5377_v0  ;;  %v3205_v46 = vand.u32 4294901760, %v3204_v45 }
 0x993   :  { %v3206_v47 = vsub.f32 %v3204_v45, %v3205_v46 }
 0x994   :  { %5173 = vmatpush3.bf16.msra.mxu1 %v5471_v15 }
 0x995   :  { %5180 = vmatprep.subr.bf16.mxu1 %v5377_v0  ;;  %v3207_v48 = vand.u32 4294901760, %v3206_v47 }
 0x997   :  { %4844 = vmatmul.mubr.f32.vlgmr.msra.gmra.mrb[44].mxu1 %v3205_v46  ;;  %4811 = vmatmul.mubr.f32.vlgmr.msra.gmra.mrb[30].mxu0 %v3207_v48 }
 0x998   :  { %5164 = vmatpush3.bf16.msra.mxu0 %v5490_v30  ;;  %5182 = vmatpush3.bf16.msra.mxu1 %v5468_v10 }
 0x999   :  { %5165 = vmatprep.subr.bf16.mxu0 %v5377_v0  ;;  %5183 = vmatprep.subr.bf16.mxu1 %v5377_v0 }
 0x99a   :  { %4832 = vmatprep.mubr.msk.f32.mxu0 %vm5378_vm0, %v5379_v1  ;;  %4865 = vmatprep.mubr.msk.f32.mxu1 %vm5378_vm0, %v5379_v1 }
 0x99c   :  { %5167 = vmatpush3.bf16.msra.mxu0 %v5495_v31  ;;  %5185 = vmatpush3.bf16.msra.mxu1 %v5471_v15 }
 0x99d   :  { %5174 = vmatprep.subr.bf16.mxu0 %v5377_v0 }
 0x99f   :  { %4833 = vmatmul.mubr.f32.vlgmr.msra.gmra.mrb[32].mxu0 %v3204_v45  ;;  %4866 = vmatmul.mubr.f32.vlgmr.msra.gmra.mrb[46].mxu1 %v3203_v44 }
 0x9a0   :  { %5176 = vmatpush3.bf16.msra.mxu0 %v5508_v32  ;;  %4854 = vmatprep.mubr.msk.f32.mxu0 %vm5378_vm0, %v5379_v1 }
 0x9a1   :  { %5177 = vmatprep.subr.bf16.mxu0 %v5377_v0 }
 0x9a4   :  { %5179 = vmatpush3.bf16.msra.mxu0 %v5513_v33 }
 0x9a5   :  { %5186 = vmatprep.subr.bf16.mxu0 %v5377_v0 }
 0x9a7   :  { %4855 = vmatmul.mubr.f32.vlgmr.msra.gmra.mrb[34].mxu0 %v3203_v44 }
 0x9a8   :  { %4876 = vmatprep.mubr.msk.f32.mxu0 %vm5378_vm0, %v5379_v1  ;;  %5188 = vmatpush3.bf16.msra.mxu0 %v5814_v8 }
 0x9a9   :  { %5189 = vmatprep.subr.bf16.mxu0 %v5377_v0 }
 0xa62   :  { %v3300_v10 = vpop.f32.mrb[42].mxu1 }
 0xa63   :  { %v4823_v15 = vpop.f32.mrb[43].mxu1 }
 0xa6a   :  { %v3457_v30 = vpop.f32.mrb[44].mxu1  ;;  %v3209_v31 = vpop.f32.mrb[30].mxu0 }
 0xa6b   :  { %v3301_v49 = vadd.f32 %v3300_v10, %v3209_v31  ;;  %v4845_v50 = vpop.f32.mrb[45].mxu1  ;;  %v4812_v32 = vpop.f32.mrb[31].mxu0 }
 0xa72   :  { %v3380_v51 = vpop.f32.mrb[32].mxu0  ;;  %v3615_v52 = vpop.f32.mrb[46].mxu1 }
 0xa73   :  { %v3381_v53 = vadd.f32 %v3380_v51, %v3301_v49  ;;  %v4834_v54 = vpop.f32.mrb[33].mxu0  ;;  %v4867_v56 = vpop.f32.mrb[47].mxu1 }
 0xa75   :  { %v3458_v57 = vadd.f32 %v3457_v30, %v3381_v53 }
 0xa7a   :  { %v3540_v33 = vpop.f32.mrb[34].mxu0 }
 0xa7b   :  { %v3541_v58 = vadd.f32 %v3540_v33, %v3458_v57  ;;  %v4856_v60 = vpop.f32.mrb[35].mxu0 }
 0xa7d   :  { %v3616_v62 = vadd.f32 %v3615_v52, %v3541_v58 }
 0xa7f   :  { %v3619_v63 = vadd.f32 %v3616_v62, %v3130_v61 }
 0xa81   :  { %v3620_v2 = vmul.f32 %v3619_v63, %v5534_v55 }
 0xa83   :  { %5270 = vtanh.f32 %v3620_v2 }
 0xa8d   :  { %v5271_v3 = vpop.eup %5270 }
 0xa8e   :  { %v3622_v4 = vmul.f32 %v5271_v3, %v5534_v55  ;;  %v3660_v55 = vand.u32 4294901760, %v3641_v12 }
 0xa90   :  { %v3623_v5 = vadd.f32 %v3622_v4, %v5537_v59  ;;  %v3663_v59 = vand.u32 4294901760, %v3642_v13  ;;  %v3748_v18 = vsub.f32 %v3641_v12, %v3660_v55 }
 0xa92   :  { %3629 = vrot.lane.b32.xlu1 %v3623_v5, %s5383_s26  ;;  %3625 = vrot.lane.b32.xlu0 %v3623_v5, %s5382_s25  ;;  %v5818_v17 = vpack.c.bf16 %v3663_v59, %v3660_v55  ;;  %v3755_v19 = vsub.f32 %v3642_v13, %v3663_v59  ;;  %v3749_v23 = vand.u32 4294901760, %v3748_v18 }
 0xa94   :  { %5191 = vmatpush3.bf16.msra.mxu0 %v5818_v17  ;;  %v3756_v24 = vand.u32 4294901760, %v3755_v19  ;;  %v3750_v26 = vsub.f32 %v3748_v18, %v3749_v23  ;;  %v5202_v40 = vpack.c.bf16 %v3755_v19, %v3748_v18 }
 0xa95   :  { %5192 = vmatprep.subr.bf16.mxu0 %v5377_v0 }
 0xa96   :  { %3635 = vrot.lane.b32.xlu0 %v3623_v5, %s5381_s2  ;;  %v3757_v27 = vsub.f32 %v3755_v19, %v3756_v24  ;;  %v3751_v35 = vand.u32 4294901760, %v3750_v26  ;;  %v5214_v42 = vpack.c.bf16 %v3756_v24, %v3749_v23 }
 0xa98   :  { %v3758_v36 = vand.u32 4294901760, %v3757_v27 }
 0xa9a   :  { %v5196_v37 = vpack.c.bf16 %v3758_v36, %v3751_v35 }
 0xb04   :  { %v3630_v43 = vpop.permute.xlu1 %3629  ;;  %v3626_v44 = vpop.permute.xlu0 %3625 }
 0xb05   :  { %v3632_v45 = vmul.f32 %v3630_v43, %v5779_v39  ;;  %v3628_v46 = vmul.f32 %v3626_v44, %v3623_v5  ;;  %v4165_v39 = vld [vmem:[%s5865_s3] ss:$0 sm:$0xff]  ;;  %s5344_s3 = scalar_lea.vmem %s4156_s30, 128 }
 0xb06   :  { %p5345_p10 = scmp.ne.s32.totalorder %s4156_s30, %s5344_s3  ;;  %p5350_p12 = scmp.lt.s32.totalorder %s5344_s3, %s5344_s3 }
 0xb07   :  { %v3633_v47 = vadd.f32 %v3632_v45, %v3628_v46 }
 0xb08   :  { %v3636_v10 = vpop.permute.xlu0 %3635  ;;  %p5351_p13 = por %p5350_p12, %p5349_p11 }
 0xb09   :  { %5272 = vtanh.f32 %v3633_v47 }
 0xb0a   :  { %p5352_p0 = pnand %p5351_p13, %p5345_p10 }
 0xb13   :  { %v5273_v48 = vpop.eup %5272 }
 0xb14   :  { %v3638_v15 = vmul.f32 %v5273_v48, %v3636_v10 }
 0xb16   :  { %v3651_v30 = vsel %vm69_vm2, %v3638_v15, 0 }
 0xb17   :  { %v3722_v31 = vand.u32 4294901760, %v3651_v30 }
 0xb19   :  { %v3723_v49 = vsub.f32 %v3651_v30, %v3722_v31 }
 0xb1b   :  { %v3724_v50 = vand.u32 4294901760, %v3723_v49 }
 0xb1d   :  { %v3725_v32 = vsub.f32 %v3723_v49, %v3724_v50 }
 0xb1f   :  { %v3726_v51 = vand.u32 4294901760, %v3725_v32 }
 0xb21   :  { %4877 = vmatmul.mubr.f32.vlgmr.msra.gmra.mrb[36].mxu0 %v3726_v51 }
 0xb22   :  { %5194 = vmatpush3.bf16.msra.mxu0 %v5193_v34  ;;  %4887 = vmatprep.mubr.msk.f32.mxu0 %vm5378_vm0, %v5379_v1 }
 0xb23   :  { %5195 = vmatprep.subr.bf16.mxu0 %v5377_v0 }
 0xb26   :  { %5197 = vmatpush3.bf16.msra.mxu0 %v5196_v37 }
 0xb27   :  { %5198 = vmatprep.subr.bf16.mxu0 %v5377_v0 }
 0xb29   :  { %4888 = vmatmul.mubr.f32.vlgmr.msra.gmra.mrb[36].mxu0 %v3722_v31 }
 0xb2a   :  { %5200 = vmatpush3.bf16.msra.mxu0 %v5199_v38  ;;  %4898 = vmatprep.mubr.msk.f32.mxu0 %vm5378_vm0, %v5379_v1 }
 0xb2b   :  { %5201 = vmatprep.subr.bf16.mxu0 %v5377_v0 }
 0xb2e   :  { %5203 = vmatpush3.bf16.msra.mxu0 %v5202_v40 }
 0xb2f   :  { %5204 = vmatprep.subr.bf16.mxu0 %v5377_v0 }
 0xb31   :  { %4899 = vmatmul.mubr.f32.vlgmr.msra.gmra.mrb[36].mxu0 %v3723_v49 }
 0xb32   :  { %5206 = vmatpush3.bf16.msra.mxu0 %v5814_v8  ;;  %4909 = vmatprep.mubr.msk.f32.mxu0 %vm5378_vm0, %v5379_v1 }
 0xb33   :  { %5207 = vmatprep.subr.bf16.mxu0 %v5377_v0 }
 0xb36   :  { %5209 = vmatpush3.bf16.msra.mxu0 %v5818_v17 }
 0xb37   :  { %5210 = vmatprep.subr.bf16.mxu0 %v5377_v0 }
 0xb39   :  { %4910 = vmatmul.mubr.f32.vlgmr.msra.gmra.mrb[36].mxu0 %v3724_v50 }
 0xb3a   :  { %5212 = vmatpush3.bf16.msra.mxu0 %v5211_v41  ;;  %4920 = vmatprep.mubr.msk.f32.mxu0 %vm5378_vm0, %v5379_v1 }
 0xb3b   :  { %5213 = vmatprep.subr.bf16.mxu0 %v5377_v0 }
 0xb3e   :  { %5215 = vmatpush3.bf16.msra.mxu0 %v5214_v42 }
 0xb3f   :  { %5216 = vmatprep.subr.bf16.mxu0 %v5377_v0 }
 0xb41   :  { %4921 = vmatmul.mubr.f32.vlgmr.msra.gmra.mrb[36].mxu0 %v3722_v31 }
 0xb42   :  { %5218 = vmatpush3.bf16.msra.mxu0 %v5814_v8  ;;  %4931 = vmatprep.mubr.msk.f32.mxu0 %vm5378_vm0, %v5379_v1 }
 0xb43   :  { %5219 = vmatprep.subr.bf16.mxu0 %v5377_v0 }
 0xb46   :  { %5221 = vmatpush3.bf16.msra.mxu0 %v5818_v17 }
 0xb49   :  { %4932 = vmatmul.mubr.f32.vlgmr.msra.gmra.mrb[36].mxu0 %v3722_v31 }
 0xc1c   :  { %v4134_v52 = vpop.f32.mrb[36].mxu0 }
 0xc1d   :  { %v5222_v53 = vadd.f32 %v4165_v39, %v4134_v52  ;;  %v4933_v54 = vpop.f32.mrb[37].mxu0 }
 0xc1f   :  { %4138 = vmax.xlane.f32.xlu1 %v5222_v53 }
 0xcac   :  { %v4139_v56 = vpop.xlane.xlu1 %4138 }
 0xcad   :  { %v4140_v57 = vsub.f32 %v5222_v53, %v4139_v56 }
 0xcaf   :  { %v4141_v33 = vmul.f32 1.442695, %v4140_v57 }
 0xcb1   :  { %5274 = vpow2.f32 %v4141_v33 }
 0xcbb   :  { %v5275_v58 = vpop.eup %5274 }
 0xcbc   :  { %4143 = vadd.xlane.f32.xlu0 %v5275_v58 }
 0xd49   :  { %v4144_v1 = vpop.xlane.xlu0 %4143 }
 0xd4a   :  { %5276 = vlog2.f32 %v4144_v1 }
 0xd54   :  { %v5277_v0 = vpop.eup %5276 }
 0xd55   :  { %v4146_v60 = vmul.f32 0.6931472, %v5277_v0 }
 0xd57   :  { %v4147_v61 = vsub.f32 %v4140_v57, %v4146_v60 }
 0xd59   :  { %4148 = vst [vmem:[#allocation8] sm:$0xff] %v4147_v61 }
 0xd5a   :  { %5355 = shalt.err (!%p5352_p0)
}
 0xd5b   :  { %s5356_s7 = scalar_lea.hbm %s5866_s4, 128 }
 0xd5c   :  { %p5357_p1 = scmp.ne.s32.totalorder %s5866_s4, %s5356_s7  ;;  %p5360_p2 = scmp.lt.u32.totalorder %s5356_s7, %s5866_s4 }
 0xd5e   :  { %p5362_p3 = pnand %p5360_p2, %p5357_p1 }
 0xd60   :  { %5365 = shalt.err (!%p5362_p3)
}
 0xd61   :  { %4158 = dma.vmem_to_hbm [thread:$0]  %s4156_s30, 128, %s5866_s4, [#allocation4]  }
 0xd62   :  { %5370 = dma.done.wait [#allocation4], 128  }
 0xd63   :  { %5371 = vsyncadd [#allocation4], 4294967168 }
 0xd64   :  { %4162 = vsyncpa [#allocation3], 1 }
 0xd65   :  { %4163 = vsyncpa [#allocation6], 1 }
 0xd66   :  { %4164 = vsyncpa [#allocation4], 1 }

</bundles_post_ra>
